<compile_context>
chip_gen: v6e
topology: v6e:2x2x1
jax: 0.10.0
libtpu: 0.0.40
codegen_flags: <defaults>
</compile_context>

<pallas_src>
import functools
import math

import jax
import jax.numpy as jnp
from jax import lax
from jax.experimental import pallas as pl
from jax.experimental.pallas import tpu as pltpu


def bernnet_kernel(theta_ref, x_ref, w1_ref, b1_ref, w2_ref, b2_ref,
                   e_ref, u_ref, out_ref, utz_acc, filt_ref, *, K, binom):
    p = pl.program_id(0)   # phase: 0 = MLP + U^T z reduction, 1 = back-projection
    t = pl.program_id(1)   # node / eigenvector row tile

    @pl.when((p == 0) & (t == 0))
    def _init():
        utz_acc[...] = jnp.zeros_like(utz_acc)
        # Bernstein filter h(e) over the eigenvalues, built lane-dense as [1, N].
        e = e_ref[...]                          # [1, N] f32
        a = 2.0 - e
        a_pows = [jnp.ones_like(e)]             # (2 - e)^i
        b_pows = [jnp.ones_like(e)]             # e^i
        for _ in range(K):
            a_pows.append(a_pows[-1] * a)
            b_pows.append(b_pows[-1] * e)
        filt = jnp.zeros_like(e)
        for k in range(K + 1):
            # relu(theta_k) * C(K,k)/2^K on the scalar unit (SMEM read, scalar math).
            c = jnp.maximum(theta_ref[k], 0.0) * binom[k]
            filt = filt + c * (a_pows[K - k] * b_pows[k])
        filt_ref[...] = filt.astype(filt_ref.dtype)

    @pl.when(p == 0)
    def _reduce():
        # MLP on this node tile: z = relu(x @ W1 + b1) @ W2 + b2   (f32 MXU).
        h = jnp.dot(x_ref[...], w1_ref[...],
                    preferred_element_type=jnp.float32) + b1_ref[...]
        h = jnp.maximum(h, 0.0)
        z = jnp.dot(h, w2_ref[...],
                    preferred_element_type=jnp.float32) + b2_ref[...]
        # utz += U_tile^T @ z_tile, contracting U's row axis directly (no U^T copy).
        utz_acc[...] += lax.dot_general(
            u_ref[...], z.astype(u_ref.dtype),
            dimension_numbers=(((0,), (0,)), ((), ())),
            preferred_element_type=jnp.float32)

    @pl.when(p == 1)
    def _project():
        # y_tile = U_tile @ diag(h(e)) @ (U^T z): fold diag as a lane-broadcast column
        # scale of the bf16 U tile, then one bf16 MXU matmul with f32 accumulation.
        scaled = u_ref[...] * filt_ref[...]                    # [tm, N] bf16
        y = jnp.dot(scaled, utz_acc[...].astype(scaled.dtype),
                    preferred_element_type=jnp.float32)        # [tm, C] f32
        m = jnp.max(y, axis=-1, keepdims=True)
        s = y - m
        out_ref[...] = s - jnp.log(jnp.sum(jnp.exp(s), axis=-1, keepdims=True))


def bernnet_forward(x, origin_e, U, params, *, K, tile_rows=128):
    """BernNet forward (eval mode): one pallas_call, node-tiled streaming of U."""
    n, f_in = x.shape
    hidden = params["w1"].shape[1]
    c = params["w2"].shape[1]
    if n % tile_rows != 0:
        # TODO(synk): real graphs rarely have N % tile_rows == 0 — pad nodes /
        # eigenvalues and mask padded rows before log_softmax / stores.
        raise ValueError("n must be a multiple of tile_rows in this demo kernel")
    num_tiles = n // tile_rows

    x = x.astype(jnp.float32)
    u_bf = U.astype(jnp.bfloat16)                           # bf16 HBM stream for U
    e_row = origin_e.reshape(1, n).astype(jnp.float32)      # lane-dense eigenvalues
    w1 = params["w1"].astype(jnp.float32)
    b1 = params["b1"].reshape(1, hidden).astype(jnp.float32)
    w2 = params["w2"].astype(jnp.float32)
    b2 = params["b2"].reshape(1, c).astype(jnp.float32)
    theta = params["theta"].astype(jnp.float32)

    binom = tuple(math.comb(K, kk) / float(2 ** K) for kk in range(K + 1))
    kernel = functools.partial(bernnet_kernel, K=K, binom=binom)

    def resident(shape):
        nd = len(shape)
        return pl.BlockSpec(shape, lambda p, t, nd=nd: (0,) * nd)

    in_specs = [
        pl.BlockSpec(memory_space=pltpu.MemorySpace.SMEM),                # theta coeffs
        pl.BlockSpec((tile_rows, f_in), lambda p, t: ((1 - p) * t, 0)),   # x (phase 0)
        resident(w1.shape), resident(b1.shape),
        resident(w2.shape), resident(b2.shape),
        resident(e_row.shape),                                            # eigenvalues
        pl.BlockSpec((tile_rows, n), lambda p, t: (t, 0)),                # U row tiles
    ]
    # Phase 0 keeps mapping to block 0 (never stored with garbage last); phase 1 writes
    # each node tile exactly once.
    out_spec = pl.BlockSpec((tile_rows, c), lambda p, t: (p * t, 0))

    # VMEM budget: double-buffered streamed tiles + resident operands + scratch.
    vmem_bytes = (
        2 * (tile_rows * n * 2 + tile_rows * f_in * 4 + tile_rows * c * 4)
        + 2 * (f_in * hidden * 4 + 8 * hidden * 4 + hidden * c * 4 + 8 * c * 4
               + 8 * n * 4)
        + n * c * 4 + 8 * n * 2)
    vmem_bytes = max(int(vmem_bytes * 1.5), 32 * 1024 * 1024)

    # TODO(synk): for v7x megacore, run phase 1 as its own pallas_call (or shard the
    # reduction per core) so the row-tile axis can be marked "parallel"; with the shared
    # utz accumulator both grid axes must stay "arbitrary" here.
    return pl.pallas_call(
        kernel,
        out_shape=jax.ShapeDtypeStruct((n, c), jnp.float32),
        grid=(2, num_tiles),
        in_specs=in_specs,
        out_specs=out_spec,
        scratch_shapes=[
            pltpu.VMEM((n, c), jnp.float32),      # utz accumulator (U^T @ z)
            pltpu.VMEM((1, n), jnp.bfloat16),     # Bernstein filter h(e), lane-dense
        ],
        compiler_params=pltpu.CompilerParams(
            dimension_semantics=("arbitrary", "arbitrary"),
            vmem_limit_bytes=vmem_bytes),
    )(theta, x, w1, b1, w2, b2, e_row, u_bf)


def _reference_forward(x, origin_e, U, params, K):
    """Pure-JAX f32 reference of the same eval-mode forward."""
    h = jnp.maximum(x @ params["w1"] + params["b1"].reshape(1, -1), 0.0)
    z = h @ params["w2"] + params["b2"].reshape(1, -1)
    theta = jnp.maximum(params["theta"], 0.0)
    filt = jnp.zeros_like(origin_e)
    for k in range(K + 1):
        filt = filt + theta[k] * (math.comb(K, k) / float(2 ** K)) \
               * (2.0 - origin_e) ** (K - k) * origin_e ** k
    y = U @ (filt[:, None] * (U.T @ z))
    return jax.nn.log_softmax(y, axis=1)


if __name__ == "__main__":
    # Small shapes consistent with BernNet.__init__:
    #   dataset.x.shape[1] = F_IN, args.hidden = HIDDEN, dataset.num_classes = C,
    #   args.K = K; (origin_e, U) is the eigendecomposition of the normalized Laplacian.
    N = 256
    F_IN = 128
    HIDDEN = 64
    NUM_CLASSES = 8
    K = 10

    key = jax.random.PRNGKey(0)
    kx, kw1, kb1, kw2, kb2, kt = jax.random.split(key, 6)

    x = jax.random.normal(kx, (N, F_IN), jnp.float32)

    # Deterministic spectral inputs: analytic eigendecomposition of the normalized
    # Laplacian of the N-cycle (real Fourier basis; eigenvalues in [0, 2]).
    js = jnp.arange(N, dtype=jnp.float32)
    cols = [jnp.ones((N,), jnp.float32) / math.sqrt(N)]
    evals = [0.0]
    f = 1
    while len(cols) < N:
        lam = 1.0 - math.cos(2.0 * math.pi * f / N)
        ang = (2.0 * math.pi * f / N) * js
        if 2 * f == N:                               # Nyquist mode
            cols.append(jnp.cos(ang) / math.sqrt(N))
            evals.append(lam)
        else:
            cols.append(math.sqrt(2.0 / N) * jnp.cos(ang)); evals.append(lam)
            if len(cols) < N:
                cols.append(math.sqrt(2.0 / N) * jnp.sin(ang)); evals.append(lam)
        f += 1
    U = jnp.stack(cols, axis=1)                        # [N, N] eigenvectors
    origin_e = jnp.asarray(evals, dtype=jnp.float32)   # [N]   eigenvalues

    def linear_init(kw, kb, fan_in, fan_out):          # torch.nn.Linear default init
        lim = 1.0 / math.sqrt(fan_in)
        w = jax.random.uniform(kw, (fan_in, fan_out), jnp.float32, -lim, lim)
        b = jax.random.uniform(kb, (1, fan_out), jnp.float32, -lim, lim)
        return w, b

    w1, b1 = linear_init(kw1, kb1, F_IN, HIDDEN)
    w2, b2 = linear_init(kw2, kb2, HIDDEN, NUM_CLASSES)
    # Bern_prop.reset_parameters fills temp with 1; perturb so relu(theta) is exercised.
    theta = 1.0 + 0.5 * jax.random.normal(kt, (K + 1,), jnp.float32)

    params = {"w1": w1, "b1": b1, "w2": w2, "b2": b2, "theta": theta}

    out = bernnet_forward(x, origin_e, U, params, K=K)
    out = jax.block_until_ready(out)

    assert out.shape == (N, NUM_CLASSES)
    assert bool(jnp.all(jnp.isfinite(out)))
    # log_softmax rows must normalize
    assert bool(jnp.allclose(jnp.sum(jnp.exp(out), axis=1), 1.0, atol=1e-4))
    # bf16 U stream / bf16 spectral matmuls vs full-f32 reference -> loose tolerance.
    ref = _reference_forward(x, origin_e, U, params, K)
    assert float(jnp.max(jnp.abs(out - ref))) < 0.2

    print("KERNEL_OK")
</pallas_src>

<mosaic_0001>
module attributes {stable_mosaic.version = 11 : i64} {
  func.func @bernnet_kernel(%arg0: i32, %arg1: i32, %arg2: memref<11xf32, #tpu.memory_space<smem>>, %arg3: memref<128x128xf32, #tpu.memory_space<vmem>>, %arg4: memref<128x64xf32, #tpu.memory_space<vmem>>, %arg5: memref<1x64xf32, #tpu.memory_space<vmem>>, %arg6: memref<64x8xf32, #tpu.memory_space<vmem>>, %arg7: memref<1x8xf32, #tpu.memory_space<vmem>>, %arg8: memref<1x256xf32, #tpu.memory_space<vmem>>, %arg9: memref<128x256xbf16, #tpu.memory_space<vmem>>, %arg10: memref<128x8xf32, #tpu.memory_space<vmem>>, %arg11: memref<256x8xf32, #tpu.memory_space<vmem>>, %arg12: memref<1x256xbf16, #tpu.memory_space<vmem>>) attributes {dimension_semantics = [#tpu.dimension_semantics<arbitrary>, #tpu.dimension_semantics<arbitrary>], iteration_bounds = array<i64: 2, 2>, scalar_prefetch = 0 : i64, scratch_operands = 2 : i64, tpu.core_type = #tpu.core_type<tc>, window_params = [{transform_indices = @transform_0, window_bounds = array<i64: 11>}, {transform_indices = @transform_1, window_bounds = array<i64: 128, 128>}, {pipeline_mode = #tpu.pipeline_mode<synchronous>, transform_indices = @transform_2, window_bounds = array<i64: 128, 64>}, {pipeline_mode = #tpu.pipeline_mode<synchronous>, transform_indices = @transform_3, window_bounds = array<i64: 1, 64>}, {pipeline_mode = #tpu.pipeline_mode<synchronous>, transform_indices = @transform_4, window_bounds = array<i64: 64, 8>}, {pipeline_mode = #tpu.pipeline_mode<synchronous>, transform_indices = @transform_5, window_bounds = array<i64: 1, 8>}, {pipeline_mode = #tpu.pipeline_mode<synchronous>, transform_indices = @transform_6, window_bounds = array<i64: 1, 256>}, {transform_indices = @transform_7, window_bounds = array<i64: 128, 256>}, {transform_indices = @transform_8, window_bounds = array<i64: 128, 8>}]} {
    %c0_i32 = arith.constant 0 : i32
    %0 = arith.cmpi eq, %arg0, %c0_i32 : i32
    %c0_i32_0 = arith.constant 0 : i32
    %1 = arith.cmpi eq, %arg1, %c0_i32_0 : i32
    %2 = arith.andi %0, %1 : i1
    %3 = arith.extui %2 : i1 to i32
    %c0_i32_1 = arith.constant 0 : i32
    %4 = arith.cmpi ne, %3, %c0_i32_1 : i32
    scf.if %4 {
      %cst = arith.constant 0.000000e+00 : f32
      %11 = vector.broadcast %cst : f32 to vector<256x8xf32>
      %c0 = arith.constant 0 : index
      %c0_5 = arith.constant 0 : index
      %12 = vector.load %arg11[%c0, %c0_5] : memref<256x8xf32, #tpu.memory_space<vmem>>, vector<256x8xf32>
      tpu.vector_store %arg11[%c0, %c0_5], %11 {strides = array<i32>} : memref<256x8xf32, #tpu.memory_space<vmem>>, vector<256x8xf32>,
      %c0_6 = arith.constant 0 : index
      %c0_7 = arith.constant 0 : index
      %13 = vector.load %arg8[%c0_6, %c0_7] : memref<1x256xf32, #tpu.memory_space<vmem>>, vector<1x256xf32>
      %cst_8 = arith.constant 2.000000e+00 : f32
      %14 = vector.broadcast %cst_8 : f32 to vector<1x256xf32>
      %15 = arith.subf %14, %13 : vector<1x256xf32>
      %cst_9 = arith.constant 1.000000e+00 : f32
      %16 = vector.broadcast %cst_9 : f32 to vector<1x256xf32>
      %cst_10 = arith.constant 1.000000e+00 : f32
      %17 = vector.broadcast %cst_10 : f32 to vector<1x256xf32>
      %18 = arith.mulf %16, %15 : vector<1x256xf32>
      %19 = arith.mulf %17, %13 : vector<1x256xf32>
      %20 = arith.mulf %18, %15 : vector<1x256xf32>
      %21 = arith.mulf %19, %13 : vector<1x256xf32>
      %22 = arith.mulf %20, %15 : vector<1x256xf32>
      %23 = arith.mulf %21, %13 : vector<1x256xf32>
      %24 = arith.mulf %22, %15 : vector<1x256xf32>
      %25 = arith.mulf %23, %13 : vector<1x256xf32>
      %26 = arith.mulf %24, %15 : vector<1x256xf32>
      %27 = arith.mulf %25, %13 : vector<1x256xf32>
      %28 = arith.mulf %26, %15 : vector<1x256xf32>
      %29 = arith.mulf %27, %13 : vector<1x256xf32>
      %30 = arith.mulf %28, %15 : vector<1x256xf32>
      %31 = arith.mulf %29, %13 : vector<1x256xf32>
      %32 = arith.mulf %30, %15 : vector<1x256xf32>
      %33 = arith.mulf %31, %13 : vector<1x256xf32>
      %34 = arith.mulf %32, %15 : vector<1x256xf32>
      %35 = arith.mulf %33, %13 : vector<1x256xf32>
      %36 = arith.mulf %34, %15 : vector<1x256xf32>
      %37 = arith.mulf %35, %13 : vector<1x256xf32>
      %cst_11 = arith.constant 0.000000e+00 : f32
      %38 = vector.broadcast %cst_11 : f32 to vector<1x256xf32>
      %c0_12 = arith.constant 0 : index
      %39 = memref.load %arg2[%c0_12] : memref<11xf32, #tpu.memory_space<smem>>
      %cst_13 = arith.constant 0.000000e+00 : f32
      %40 = arith.maximumf %39, %cst_13 : f32
      %cst_14 = arith.constant 9.765625E-4 : f32
      %41 = arith.mulf %40, %cst_14 : f32
      %42 = arith.mulf %36, %17 : vector<1x256xf32>
      %43 = vector.broadcast %41 : f32 to vector<1x256xf32>
      %44 = arith.mulf %43, %42 : vector<1x256xf32>
      %45 = arith.addf %38, %44 : vector<1x256xf32>
      %c1 = arith.constant 1 : index
      %46 = memref.load %arg2[%c1] : memref<11xf32, #tpu.memory_space<smem>>
      %cst_15 = arith.constant 0.000000e+00 : f32
      %47 = arith.maximumf %46, %cst_15 : f32
      %cst_16 = arith.constant 0.009765625 : f32
      %48 = arith.mulf %47, %cst_16 : f32
      %49 = arith.mulf %34, %19 : vector<1x256xf32>
      %50 = vector.broadcast %48 : f32 to vector<1x256xf32>
      %51 = arith.mulf %50, %49 : vector<1x256xf32>
      %52 = arith.addf %45, %51 : vector<1x256xf32>
      %c2 = arith.constant 2 : index
      %53 = memref.load %arg2[%c2] : memref<11xf32, #tpu.memory_space<smem>>
      %cst_17 = arith.constant 0.000000e+00 : f32
      %54 = arith.maximumf %53, %cst_17 : f32
      %cst_18 = arith.constant 0.0439453125 : f32
      %55 = arith.mulf %54, %cst_18 : f32
      %56 = arith.mulf %32, %21 : vector<1x256xf32>
      %57 = vector.broadcast %55 : f32 to vector<1x256xf32>
      %58 = arith.mulf %57, %56 : vector<1x256xf32>
      %59 = arith.addf %52, %58 : vector<1x256xf32>
      %c3 = arith.constant 3 : index
      %60 = memref.load %arg2[%c3] : memref<11xf32, #tpu.memory_space<smem>>
      %cst_19 = arith.constant 0.000000e+00 : f32
      %61 = arith.maximumf %60, %cst_19 : f32
      %cst_20 = arith.constant 0.1171875 : f32
      %62 = arith.mulf %61, %cst_20 : f32
      %63 = arith.mulf %30, %23 : vector<1x256xf32>
      %64 = vector.broadcast %62 : f32 to vector<1x256xf32>
      %65 = arith.mulf %64, %63 : vector<1x256xf32>
      %66 = arith.addf %59, %65 : vector<1x256xf32>
      %c4 = arith.constant 4 : index
      %67 = memref.load %arg2[%c4] : memref<11xf32, #tpu.memory_space<smem>>
      %cst_21 = arith.constant 0.000000e+00 : f32
      %68 = arith.maximumf %67, %cst_21 : f32
      %cst_22 = arith.constant 0.205078125 : f32
      %69 = arith.mulf %68, %cst_22 : f32
      %70 = arith.mulf %28, %25 : vector<1x256xf32>
      %71 = vector.broadcast %69 : f32 to vector<1x256xf32>
      %72 = arith.mulf %71, %70 : vector<1x256xf32>
      %73 = arith.addf %66, %72 : vector<1x256xf32>
      %c5 = arith.constant 5 : index
      %74 = memref.load %arg2[%c5] : memref<11xf32, #tpu.memory_space<smem>>
      %cst_23 = arith.constant 0.000000e+00 : f32
      %75 = arith.maximumf %74, %cst_23 : f32
      %cst_24 = arith.constant 0.24609375 : f32
      %76 = arith.mulf %75, %cst_24 : f32
      %77 = arith.mulf %26, %27 : vector<1x256xf32>
      %78 = vector.broadcast %76 : f32 to vector<1x256xf32>
      %79 = arith.mulf %78, %77 : vector<1x256xf32>
      %80 = arith.addf %73, %79 : vector<1x256xf32>
      %c6 = arith.constant 6 : index
      %81 = memref.load %arg2[%c6] : memref<11xf32, #tpu.memory_space<smem>>
      %cst_25 = arith.constant 0.000000e+00 : f32
      %82 = arith.maximumf %81, %cst_25 : f32
      %cst_26 = arith.constant 0.205078125 : f32
      %83 = arith.mulf %82, %cst_26 : f32
      %84 = arith.mulf %24, %29 : vector<1x256xf32>
      %85 = vector.broadcast %83 : f32 to vector<1x256xf32>
      %86 = arith.mulf %85, %84 : vector<1x256xf32>
      %87 = arith.addf %80, %86 : vector<1x256xf32>
      %c7 = arith.constant 7 : index
      %88 = memref.load %arg2[%c7] : memref<11xf32, #tpu.memory_space<smem>>
      %cst_27 = arith.constant 0.000000e+00 : f32
      %89 = arith.maximumf %88, %cst_27 : f32
      %cst_28 = arith.constant 0.1171875 : f32
      %90 = arith.mulf %89, %cst_28 : f32
      %91 = arith.mulf %22, %31 : vector<1x256xf32>
      %92 = vector.broadcast %90 : f32 to vector<1x256xf32>
      %93 = arith.mulf %92, %91 : vector<1x256xf32>
      %94 = arith.addf %87, %93 : vector<1x256xf32>
      %c8 = arith.constant 8 : index
      %95 = memref.load %arg2[%c8] : memref<11xf32, #tpu.memory_space<smem>>
      %cst_29 = arith.constant 0.000000e+00 : f32
      %96 = arith.maximumf %95, %cst_29 : f32
      %cst_30 = arith.constant 0.0439453125 : f32
      %97 = arith.mulf %96, %cst_30 : f32
      %98 = arith.mulf %20, %33 : vector<1x256xf32>
      %99 = vector.broadcast %97 : f32 to vector<1x256xf32>
      %100 = arith.mulf %99, %98 : vector<1x256xf32>
      %101 = arith.addf %94, %100 : vector<1x256xf32>
      %c9 = arith.constant 9 : index
      %102 = memref.load %arg2[%c9] : memref<11xf32, #tpu.memory_space<smem>>
      %cst_31 = arith.constant 0.000000e+00 : f32
      %103 = arith.maximumf %102, %cst_31 : f32
      %cst_32 = arith.constant 0.009765625 : f32
      %104 = arith.mulf %103, %cst_32 : f32
      %105 = arith.mulf %18, %35 : vector<1x256xf32>
      %106 = vector.broadcast %104 : f32 to vector<1x256xf32>
      %107 = arith.mulf %106, %105 : vector<1x256xf32>
      %108 = arith.addf %101, %107 : vector<1x256xf32>
      %c10 = arith.constant 10 : index
      %109 = memref.load %arg2[%c10] : memref<11xf32, #tpu.memory_space<smem>>
      %cst_33 = arith.constant 0.000000e+00 : f32
      %110 = arith.maximumf %109, %cst_33 : f32
      %cst_34 = arith.constant 9.765625E-4 : f32
      %111 = arith.mulf %110, %cst_34 : f32
      %112 = arith.mulf %16, %37 : vector<1x256xf32>
      %113 = vector.broadcast %111 : f32 to vector<1x256xf32>
      %114 = arith.mulf %113, %112 : vector<1x256xf32>
      %115 = arith.addf %108, %114 : vector<1x256xf32>
      %116 = arith.truncf %115 : vector<1x256xf32> to vector<1x256xbf16>
      %c0_35 = arith.constant 0 : index
      %c0_36 = arith.constant 0 : index
      %117 = vector.load %arg12[%c0_35, %c0_36] : memref<1x256xbf16, #tpu.memory_space<vmem>>, vector<1x256xbf16>
      tpu.vector_store %arg12[%c0_35, %c0_36], %116 {strides = array<i32>} : memref<1x256xbf16, #tpu.memory_space<vmem>>, vector<1x256xbf16>,
    } else {
    }
    %c0_i32_2 = arith.constant 0 : i32
    %5 = arith.cmpi eq, %arg0, %c0_i32_2 : i32
    %6 = arith.extui %5 : i1 to i32
    %c0_i32_3 = arith.constant 0 : i32
    %7 = arith.cmpi ne, %6, %c0_i32_3 : i32
    scf.if %7 {
      %c0 = arith.constant 0 : index
      %c0_5 = arith.constant 0 : index
      %11 = vector.load %arg3[%c0, %c0_5] : memref<128x128xf32, #tpu.memory_space<vmem>>, vector<128x128xf32>
      %c0_6 = arith.constant 0 : index
      %c0_7 = arith.constant 0 : index
      %12 = vector.load %arg4[%c0_6, %c0_7] : memref<128x64xf32, #tpu.memory_space<vmem>>, vector<128x64xf32>
      %cst = arith.constant dense<0.000000e+00> : vector<128x64xf32>
      %13 = tpu.matmul %11, %12, %cst {dimension_numbers = #tpu.dot_dimension_numbers<[1], [0], [0], [1], [0, 0, 1, 1], [], []>} : vector<128x128xf32>, vector<128x64xf32>, vector<128x64xf32> -> vector<128x64xf32>
      %c0_8 = arith.constant 0 : index
      %c0_9 = arith.constant 0 : index
      %14 = vector.load %arg5[%c0_8, %c0_9] : memref<1x64xf32, #tpu.memory_space<vmem>>, vector<1x64xf32>
      %15 = vector.broadcast %14 : vector<1x64xf32> to vector<128x64xf32>
      %16 = arith.addf %13, %15 : vector<128x64xf32>
      %cst_10 = arith.constant 0.000000e+00 : f32
      %17 = vector.broadcast %cst_10 : f32 to vector<128x64xf32>
      %18 = arith.maximumf %16, %17 : vector<128x64xf32>
      %c0_11 = arith.constant 0 : index
      %c0_12 = arith.constant 0 : index
      %19 = vector.load %arg6[%c0_11, %c0_12] : memref<64x8xf32, #tpu.memory_space<vmem>>, vector<64x8xf32>
      %cst_13 = arith.constant dense<0.000000e+00> : vector<128x8xf32>
      %20 = tpu.matmul %18, %19, %cst_13 {dimension_numbers = #tpu.dot_dimension_numbers<[1], [0], [0], [1], [0, 0, 1, 1], [], []>} : vector<128x64xf32>, vector<64x8xf32>, vector<128x8xf32> -> vector<128x8xf32>
      %c0_14 = arith.constant 0 : index
      %c0_15 = arith.constant 0 : index
      %21 = vector.load %arg7[%c0_14, %c0_15] : memref<1x8xf32, #tpu.memory_space<vmem>>, vector<1x8xf32>
      %22 = vector.broadcast %21 : vector<1x8xf32> to vector<128x8xf32>
      %23 = arith.addf %20, %22 : vector<128x8xf32>
      %c0_16 = arith.constant 0 : index
      %c0_17 = arith.constant 0 : index
      %24 = vector.load %arg11[%c0_16, %c0_17] : memref<256x8xf32, #tpu.memory_space<vmem>>, vector<256x8xf32>
      %c0_18 = arith.constant 0 : index
      %c0_19 = arith.constant 0 : index
      %25 = vector.load %arg9[%c0_18, %c0_19] : memref<128x256xbf16, #tpu.memory_space<vmem>>, vector<128x256xbf16>
      %26 = arith.truncf %23 : vector<128x8xf32> to vector<128x8xbf16>
      %cst_20 = arith.constant dense<0.000000e+00> : vector<256x8xf32>
      %27 = tpu.matmul %25, %26, %cst_20 {dimension_numbers = #tpu.dot_dimension_numbers<[0], [0], [1], [1], [0, 1, 1, 1], [], []>} : vector<128x256xbf16>, vector<128x8xbf16>, vector<256x8xf32> -> vector<256x8xf32>
      %28 = arith.addf %24, %27 : vector<256x8xf32>
      %c0_21 = arith.constant 0 : index
      %c0_22 = arith.constant 0 : index
      %29 = vector.load %arg11[%c0_21, %c0_22] : memref<256x8xf32, #tpu.memory_space<vmem>>, vector<256x8xf32>
      tpu.vector_store %arg11[%c0_21, %c0_22], %28 {strides = array<i32>} : memref<256x8xf32, #tpu.memory_space<vmem>>, vector<256x8xf32>,
    } else {
    }
    %c1_i32 = arith.constant 1 : i32
    %8 = arith.cmpi eq, %arg0, %c1_i32 : i32
    %9 = arith.extui %8 : i1 to i32
    %c0_i32_4 = arith.constant 0 : i32
    %10 = arith.cmpi ne, %9, %c0_i32_4 : i32
    scf.if %10 {
      %c0 = arith.constant 0 : index
      %c0_5 = arith.constant 0 : index
      %11 = vector.load %arg9[%c0, %c0_5] : memref<128x256xbf16, #tpu.memory_space<vmem>>, vector<128x256xbf16>
      %c0_6 = arith.constant 0 : index
      %c0_7 = arith.constant 0 : index
      %12 = vector.load %arg12[%c0_6, %c0_7] : memref<1x256xbf16, #tpu.memory_space<vmem>>, vector<1x256xbf16>
      %13 = vector.broadcast %12 : vector<1x256xbf16> to vector<128x256xbf16>
      %14 = arith.mulf %11, %13 : vector<128x256xbf16>
      %c0_8 = arith.constant 0 : index
      %c0_9 = arith.constant 0 : index
      %15 = vector.load %arg11[%c0_8, %c0_9] : memref<256x8xf32, #tpu.memory_space<vmem>>, vector<256x8xf32>
      %16 = arith.truncf %15 : vector<256x8xf32> to vector<256x8xbf16>
      %cst = arith.constant dense<0.000000e+00> : vector<128x8xf32>
      %17 = tpu.matmul %14, %16, %cst {dimension_numbers = #tpu.dot_dimension_numbers<[1], [0], [0], [1], [0, 0, 1, 1], [], []>} : vector<128x256xbf16>, vector<256x8xbf16>, vector<128x8xf32> -> vector<128x8xf32>
      %cst_10 = arith.constant dense<0xFF800000> : vector<128xf32>
      %18 = vector.multi_reduction <maximumf>, %17, %cst_10 [1] : vector<128x8xf32> to vector<128xf32>
      %19 = vector.shape_cast %18 : vector<128xf32> to vector<128x1xf32>
      %20 = vector.broadcast %19 : vector<128x1xf32> to vector<128x8xf32>
      %21 = arith.subf %17, %20 : vector<128x8xf32>
      %22 = math.exp %21 : vector<128x8xf32>
      %cst_11 = arith.constant dense<0.000000e+00> : vector<128xf32>
      %23 = vector.multi_reduction <add>, %22, %cst_11 [1] : vector<128x8xf32> to vector<128xf32>
      %24 = vector.shape_cast %23 : vector<128xf32> to vector<128x1xf32>
      %25 = math.log %24 : vector<128x1xf32>
      %26 = vector.broadcast %25 : vector<128x1xf32> to vector<128x8xf32>
      %27 = arith.subf %21, %26 : vector<128x8xf32>
      %c0_12 = arith.constant 0 : index
      %c0_13 = arith.constant 0 : index
      %28 = vector.load %arg10[%c0_12, %c0_13] : memref<128x8xf32, #tpu.memory_space<vmem>>, vector<128x8xf32>
      tpu.vector_store %arg10[%c0_12, %c0_13], %27 {strides = array<i32>} : memref<128x8xf32, #tpu.memory_space<vmem>>, vector<128x8xf32>,
    } else {
    }
    return
  }
  func.func @transform_0(%arg0: i32, %arg1: i32) -> i32 {
    %c0_i32 = arith.constant 0 : i32
    %c0_i32_0 = arith.constant 0 : i32
    return %c0_i32 : i32
  }
  func.func @transform_1(%arg0: i32, %arg1: i32) -> (i32, i32) {
    %c1_i32 = arith.constant 1 : i32
    %0 = arith.subi %c1_i32, %arg0 : i32
    %1 = arith.muli %0, %arg1 : i32
    %c0_i32 = arith.constant 0 : i32
    %c0_i32_0 = arith.constant 0 : i32
    return %1, %c0_i32 : i32, i32
  }
  func.func @transform_2(%arg0: i32, %arg1: i32) -> (i32, i32) {
    %c0_i32 = arith.constant 0 : i32
    %c0_i32_0 = arith.constant 0 : i32
    %c0_i32_1 = arith.constant 0 : i32
    return %c0_i32, %c0_i32_0 : i32, i32
  }
  func.func @transform_3(%arg0: i32, %arg1: i32) -> (i32, i32) {
    %c0_i32 = arith.constant 0 : i32
    %c0_i32_0 = arith.constant 0 : i32
    %c0_i32_1 = arith.constant 0 : i32
    return %c0_i32, %c0_i32_0 : i32, i32
  }
  func.func @transform_4(%arg0: i32, %arg1: i32) -> (i32, i32) {
    %c0_i32 = arith.constant 0 : i32
    %c0_i32_0 = arith.constant 0 : i32
    %c0_i32_1 = arith.constant 0 : i32
    return %c0_i32, %c0_i32_0 : i32, i32
  }
  func.func @transform_5(%arg0: i32, %arg1: i32) -> (i32, i32) {
    %c0_i32 = arith.constant 0 : i32
    %c0_i32_0 = arith.constant 0 : i32
    %c0_i32_1 = arith.constant 0 : i32
    return %c0_i32, %c0_i32_0 : i32, i32
  }
  func.func @transform_6(%arg0: i32, %arg1: i32) -> (i32, i32) {
    %c0_i32 = arith.constant 0 : i32
    %c0_i32_0 = arith.constant 0 : i32
    %c0_i32_1 = arith.constant 0 : i32
    return %c0_i32, %c0_i32_0 : i32, i32
  }
  func.func @transform_7(%arg0: i32, %arg1: i32) -> (i32, i32) {
    %c0_i32 = arith.constant 0 : i32
    %c0_i32_0 = arith.constant 0 : i32
    return %arg1, %c0_i32 : i32, i32
  }
  func.func @transform_8(%arg0: i32, %arg1: i32) -> (i32, i32) {
    %0 = arith.muli %arg0, %arg1 : i32
    %c0_i32 = arith.constant 0 : i32
    %c0_i32_0 = arith.constant 0 : i32
    return %0, %c0_i32 : i32, i32
  }
}

</mosaic_0001>

<bundles_post_ra>
// kernel: tpu_custom_call.1
= control target key start
LH: loop header
LB: loop body
LE: loop exit
PB: predicated region body
PF: predicated region fallthrough
CT: control target
= control target key end

     0   :  { %s3389_s0 = inlined_call_operand.vmem [shape: f32[11], index: 0, kind: input, shape index: {}]   ;;  %s3390_s1 = inlined_call_operand.vmem [shape: f32[256,128], index: 1, kind: input, shape index: {}]   ;;  %s3391_s2 = inlined_call_operand.vmem [shape: f32[128,64], index: 2, kind: input, shape index: {}]   ;;  %s3392_s3 = inlined_call_operand.vmem [shape: f32[1,64], index: 3, kind: input, shape index: {}]   ;;  %s3393_s4 = inlined_call_operand.vmem [shape: f32[64,8], index: 4, kind: input, shape index: {}]   ;;  %s3394_s5 = inlined_call_operand.vmem [shape: f32[1,8], index: 5, kind: input, shape index: {}]   ;;  %s3395_s6 = inlined_call_operand.vmem [shape: f32[1,256], index: 6, kind: input, shape index: {}]   ;;  %s3396_s7 = inlined_call_operand.hbm [shape: bf16[256,256], index: 7, kind: input, shape index: {}]   ;;  %s3397_s8 = inlined_call_operand.vmem [shape: f32[256,8], index: 8, kind: output, shape index: {}]  }
   0x1   :  { %3402 = sst [smem:[#allocation12_spill]] %s3389_s0 }
   0x2   :  { %3403 = sst [smem:[#allocation13_spill]] %s3390_s1 }
   0x3   :  { %3404 = sst [smem:[#allocation14_spill]] %s3394_s5 }
   0x4   :  { %3405 = sst [smem:[#allocation15_spill]] %s3395_s6 }
   0x5   :  { %3406 = sst [smem:[#allocation16_spill]] %s3396_s7 }
   0x6   :  { %13 = vsyncpa [#allocation6], 0 }
   0x7   :  { %14 = vsyncpa [#allocation5], 0 }
   0x8   :  { %16 = vsyncpa [#allocation5 + $0x1], 0  ;;  %s2747_s27 = smov 0   ;;  %s2749_s28 = smov 0  }
   0x9   :  { %s2751_s29 = smov 0   ;;  %s2753_s30 = smov 0  }
   0xa   :  { %s2755_s9 = smov 0   ;;  %s2757_s10 = smov 0  }
   0xb   :  { %s2759_s11 = smov 0   ;;  %s2761_s12 = smov 0  }
   0xc LB: > { %3407 = sst [smem:[#allocation10_spill]] %s2688_s11  ;;  %s1998_s13 = sadd.s32 4294967295, %s2692_s12   ;;  %s2692_s12 = sphi %s2761_s12, %s22_s12   ;;  %s2688_s11 = sphi %s2759_s11, %s3427_s11   ;;  %s2684_s10 = sphi %s2757_s10, %s3426_s10   ;;  %s2680_s9 = sphi %s2755_s9, %s3421_s9   ;;  %s2676_s30 = sphi %s2753_s30, %s3425_s30   ;;  %s2672_s29 = sphi %s2751_s29, %s3424_s29   ;;  %s2668_s28 = sphi %s2749_s28, %s3423_s28   ;;  %s2664_s27 = sphi %s2747_s27, %s3422_s27  }
   0xd   : > { %3408 = sst [smem:[#allocation11_spill]] %s2692_s12  ;;  %s197_s14 = sadd.s32 1, %s2672_s29 }
   0xe   : > { %p204_p0 = scmp.ne.s32.totalorder %s2672_s29, %s2668_s28  ;;  %p205_p1 = scmp.eq.s32.totalorder %s2692_s12, 0 }
   0xf   : > { %p210_p2 = scmp.ne.s32.totalorder %s2668_s28, %s2664_s27  ;;  %p2791_p3 = scmp.eq.s32.totalorder %s1998_s13, 0 }
  0x10   : > { %p206_p4 = por %p205_p1, %p204_p0  ;;  %p2000_p5 = scmp.ge.s32.totalorder %s2692_s12, 1 }
  0x11   : > { %p2798_p6 = por %p2791_p3, %p210_p2  ;;  %p249_p7 = scmp.lt.s32.totalorder %s2692_s12, 5 }
  0x12   : > { %s3411_s0 = sld [smem:[#allocation12_spill]]  ;;  %p2418_p10 = scmp.lt.s32.totalorder %s2692_s12, 4 }
  0x13   : > { %s3410_s16 = scalar_select %p2798_p6, 1, 0 }
  0x14   : > { %p2806_p8 = pnand %p2000_p5, %p249_p7  ;;  %p2815_p12 = pnand %p2418_p10, %p206_p4 }
  0x16   : > { %s3412_s20 = scalar_select %p2806_p8, 1, 0 }
  0x17   : > { %p2409_p9 = pneg %p2806_p8 }
  0x18   : > { %s262_s19 = sshll.u32 %s3411_s0, 4  ;;  %s263_s19 = int_to_ptr.vmem [resolvable:$true] %s262_s19 }
  0x19   : > { %p2410_p11 = pnand %p2409_p9, %p2791_p3  ;;  %s2579_s22 = scalar_lea.vmem %s263_s19, 16 }
  0x1a   : > { %p2580_p13 = scmp.ne.s32.totalorder %s263_s19, %s2579_s22  ;;  %p2587_p5 = scmp.lt.s32.totalorder %s263_s19, %s263_s19 }
  0x1b   : > { %p2581_p0 = pneg %p2410_p11  ;;  %p2588_p7 = scmp.lt.s32.totalorder %s2579_s22, %s2579_s22 }
  0x1d   : > { %p2582_p1 = pnand %p2581_p0, %p2580_p13  ;;  %p2589_p6 = por %p2588_p7, %p2587_p5 }
  0x1f   : > { %p2583_p2 = pneg %p2582_p1 }
  0x21   : > { %p2590_p8 = pnand %p2589_p6, %p2583_p2 }
  0x23   : > { %2593 = shalt.err (!%p2590_p8)
}
  0x24   : > { %s2694_s23 = smov [#allocation4]   ;;  %s31_s24 = sadd.s32 1, %s2684_s10 }
  0x25   : > { %2412 = dma.vmem_to_smem (!%p2410_p11), %s263_s19, 16, %s2694_s23, [#allocation6]  }
  0x26   : > { %s34_s25 = sadd.s32 1, %s2688_s11  ;;  %p32_p4 = scmp.ge.s32.totalorder %s31_s24, 2 }
  0x27   : > { %s301_s26 = sand.u32 1, %s2672_s29   ;;  %s2082_s17 = sshll.u32 %s2684_s10, 11 }
  0x28   : > { %s2003_s27 = sshll.u32 %s301_s26, 7  ;;  %s3429_s24 = smov (%p32_p4, %s31_s24), 0 }
  0x29   : > { %s3431_s25 = smov (!%p32_p4, %s34_s25), %s2688_s11  ;;  %s194_s13 = ssub.s32 %s2684_s10, %s3429_s24 }
  0x2a   : > { %p36_p6 = scmp.ge.s32.totalorder %s3431_s25, 2  ;;  %p195_p8 = scmp.eq.s32.totalorder %s194_s13, 0 }
  0x2b   : > { %s305_s18 = scalar_lea.vmem [#allocation7], %s2003_s27  ;;  %s3414_s7 = sld [smem:[#allocation16_spill]] }
  0x2c   : > { %s313_s22 = sshll.u32 %s305_s18, 4  ;;  %s3433_s25 = smov (%p36_p6, %s3431_s25), 0  ;;  %s314_s22 = int_to_ptr.vmem [resolvable:$true] %s313_s22 }
  0x2d   : > { %s2833_s19 = scalar_select %p195_p8, %s2672_s29, %s197_s14  }
  0x2e   : > { %s302_s5 = scalar_lea.sflag [#allocation5], %s301_s26  ;;  %p2596_p9 = pneg %p2815_p12 }
  0x2f   : > { %s2607_s11 = scalar_lea.vmem %s314_s22, 2048  ;;  %s2695_s13 = smov [#allocation7]  }
  0x30   : > { %p2608_p10 = scmp.ne.s32.totalorder %s314_s22, %s2607_s11  ;;  %s2612_s27 = sshll.u32 %s2695_s13, 4  ;;  %s2613_s27 = int_to_ptr.vmem [resolvable:$false] %s2612_s27 }
  0x31   : > { %s312_s12 = scalar_lea.hbm %s3414_s7, %s2082_s17  ;;  %s2614_s18 = scalar_lea.vmem %s2613_s27, 4096 }
  0x32   : > { %p2610_p11 = pnand %p2608_p10, %p2596_p9  ;;  %p2615_p0 = scmp.lt.s32.totalorder %s314_s22, %s2613_s27 }
  0x33   : > { %p2616_p1 = scmp.lt.s32.totalorder %s2614_s18, %s2607_s11 }
  0x34   : > { %p2611_p13 = pneg %p2610_p11 }
  0x35   : > { %p2617_p2 = por %p2616_p1, %p2615_p0 }
  0x37   : > { %p2618_p5 = pnand %p2617_p2, %p2611_p13 }
  0x39   : > { %2621 = shalt.err (!%p2618_p5)
}
  0x3a   : > { %s2696_s14 = smov 128   ;;  %s2697_s0 = smov 8  }
  0x3b   : > { %2416 = dma.hbm_to_vmem [thread:$0]  (!%p2815_p12), %s312_s12, 2048, %s314_s22, %s302_s5, %s2696_s14, %s2696_s14, %s2697_s0  }
  0x3c   : > { %p3415_p7 = scmp.ne.s32.totalorder %s3412_s20, 0 }
  0x3e   : > { %325 = sbr.rel (%p3415_p7) target bundleno = 1465 (0x5b9), region = 52 }
  0x43   : > { %2655 = dma.done.wait (%p2791_p3), [#allocation6], 16  }
  0x44   : > { %2657 = vsyncadd (%p2791_p3), [#allocation6], 4294967280  ;;  %s331_s11 = sand.u32 1, %s2668_s28   ;;  %p3416_p4 = scmp.ne.s32.totalorder %s3410_s16, 0 }
  0x45   : > { %s2009_s26 = sshll.u32 %s331_s11, 7  ;;  %s332_s17 = scalar_lea.sflag [#allocation5], %s331_s11 }
  0x46   : > { %s2849_s23 = scalar_lea.vmem [#allocation7], %s2009_s26 }
  0x47   : > { %2659 = dma.done.wait (%p3416_p4), %s332_s17, 2048  }
  0x48   : > { %2661 = vsyncadd (%p3416_p4), %s332_s17, 4294965248 }
  0x49   : > { %340 = sfence }
  0x4a   : > { %s377_s5 = ssub.s32 1, %s2680_s9  ;;  %s388_s12 = smul.u32 %s2676_s30, %s2680_s9 }
  0x4b   : > { %s378_s15 = smul.u32 %s2676_s30, %s377_s5  ;;  %p397_p3 = scmp.eq.s32.totalorder %s2680_s9, 0 }
  0x4c   : > { %s2012_s20 = sshll.u32 %s388_s12, 4  ;;  %p398_p12 = scmp.eq.s32.totalorder %s2676_s30, 0 }
  0x4d   : > { %s2010_s21 = sshll.u32 %s378_s15, 4  ;;  %p390_p6 = scmp.lt.s32.totalorder %s2012_s20, 31 }
  0x4e   : > { %p380_p8 = scmp.lt.s32.totalorder %s2010_s21, 31  ;;  %p399_p9 = pnand %p398_p12, %p397_p3 }
  0x4f   : > { %s3435_s20 = smov (!%p390_p6, %s2012_s20), 31  ;;  %s3417_s1 = sld [smem:[#allocation13_spill]] }
  0x50   : > { %s3437_s21 = smov (!%p380_p8, %s2010_s21), 31  ;;  %s2013_s16 = sshll.u32 %s3435_s20, 3 }
  0x51   : > { %s2011_s22 = sshll.u32 %s3437_s21, 3  ;;  %s2864_s18 = scalar_lea.vmem %s3397_s8, %s2013_s16 }
  0x52   : > { %402 = sbr.rel (%p399_p9) target bundleno = 141 (0x8d), region = 64  ;;  %s3418_s6 = sld [smem:[#allocation15_spill]] (!%p399_p9) }
  0x53   : > { %s2876_s17 = sld [smem:[#allocation4]] (!%p399_p9)  ;;  %s2699_s21 = smov (!%p399_p9), 0.0  }
  0x54   : > { %s2014_s5 = sld [smem:[#allocation4 + $0x1]] (!%p399_p9) }
  0x55   : > { %s2869_s11 = scalar_lea.vmem %s3417_s1, %s2011_s22  ;;  %s2015_s12 = sld [smem:[#allocation4 + $0x2]] (!%p399_p9) }
  0x56   : > { %s2016_s15 = sld [smem:[#allocation4 + $0x3]] (!%p399_p9) }
  0x57   : > { %vm403_vm0 = vcmask 64512   ;;  %v2698_v1 = vmov 0.0   ;;  %s2017_s20 = sld [smem:[#allocation4 + $0x4]]  ;;  %v532_v51 = vlaneseq  ;;  %v2700_v60 = vmov 1966171168  }
  0x58   : > { %v2874_v0 = vld [vmem:[%s3418_s6] sm:$0x3]  ;;  %404 = vst.msk [vmem:[#allocation2] sm:$0xff] %vm403_vm0, %v2698_v1  ;;  %405 = vst.msk [vmem:[#allocation2 + $0x8] sm:$0xff] %vm403_vm0, %v2698_v1  ;;  %s2018_s13 = sld [smem:[#allocation4 + $0x5]]  ;;  %v548_v61 = vunpack.c.l.s4 %v2700_v60  ;;  %vm562_vm1 = vcmask 1040384  }
  0x59   : > { %406 = vst.msk [vmem:[#allocation2 + $0x10] sm:$0xff] %vm403_vm0, %v2698_v1  ;;  %407 = vst.msk [vmem:[#allocation2 + $0x18] sm:$0xff] %vm403_vm0, %v2698_v1  ;;  %v2911_v2 = vsub.f32 2.0, %v2874_v0  ;;  %v439_v3 = vmul.f32 %v2874_v0, %v2874_v0  ;;  %s457_s16 = smax.f32 %s2699_s21, %s2876_s17  ;;  %s2019_s27 = sld [smem:[#allocation4 + $0x6]]  ;;  %v533_v59 = vshrl.u32 %v532_v51, 7  ;;  %vm565_vm3 = vcmask 1041409  }
  0x5a   : > { %408 = vst.msk [vmem:[#allocation2 + $0x20] sm:$0xff] %vm403_vm0, %v2698_v1  ;;  %409 = vst.msk [vmem:[#allocation2 + $0x28] sm:$0xff] %vm403_vm0, %v2698_v1  ;;  %s463_s22 = smax.f32 %s2699_s21, %s2014_s5  ;;  %s458_s14 = smul.f32 0.0009765625, %s457_s16  ;;  %vm563_vm2 = vsmask.f32 256 }
  0x5b   : > { %410 = vst.msk [vmem:[#allocation2 + $0x30] sm:$0xff] %vm403_vm0, %v2698_v1  ;;  %411 = vst.msk [vmem:[#allocation2 + $0x38] sm:$0xff] %vm403_vm0, %v2698_v1  ;;  %v2917_v4 = vmul.f32 %v2911_v2, %v2911_v2  ;;  %v441_v5 = vmul.f32 %v439_v3, %v2874_v0  ;;  %s470_s0 = smax.f32 %s2699_s21, %s2015_s12  ;;  %s464_s30 = smul.f32 0.009765625, %s463_s22  ;;  %vm566_vm4 = vsmask.f32 1280 }
  0x5c   : > { %412 = vst.msk [vmem:[#allocation2 + $0x40] sm:$0xff] %vm403_vm0, %v2698_v1  ;;  %413 = vst.msk [vmem:[#allocation2 + $0x48] sm:$0xff] %vm403_vm0, %v2698_v1  ;;  %s477_s26 = smax.f32 %s2699_s21, %s2016_s15  ;;  %s2020_s1 = sld [smem:[#allocation4 + $0x7]]  ;;  %v459_v17 = vstv %s458_s14 }
  0x5d   : > { %414 = vst.msk [vmem:[#allocation2 + $0x50] sm:$0xff] %vm403_vm0, %v2698_v1  ;;  %415 = vst.msk [vmem:[#allocation2 + $0x58] sm:$0xff] %vm403_vm0, %v2698_v1  ;;  %v2922_v6 = vmul.f32 %v2917_v4, %v2911_v2  ;;  %v443_v8 = vmul.f32 %v441_v5, %v2874_v0  ;;  %s471_s17 = smul.f32 0.043945313, %s470_s0  ;;  %s484_s5 = smax.f32 %s2699_s21, %s2017_s20  ;;  %v466_v18 = vstv %s464_s30 }
  0x5e   : > { %416 = vst.msk [vmem:[#allocation2 + $0x60] sm:$0xff] %vm403_vm0, %v2698_v1  ;;  %417 = vst.msk [vmem:[#allocation2 + $0x68] sm:$0xff] %vm403_vm0, %v2698_v1  ;;  %s2939_s6 = sld [smem:[#allocation4 + $0x8]]  ;;  %s478_s7 = smul.f32 0.1171875, %s477_s26 }
  0x5f   : > { %418 = vst.msk [vmem:[#allocation2 + $0x70] sm:$0xff] %vm403_vm0, %v2698_v1  ;;  %419 = vst.msk [vmem:[#allocation2 + $0x78] sm:$0xff] %vm403_vm0, %v2698_v1  ;;  %v442_v7 = vmul.f32 %v2922_v6, %v2911_v2  ;;  %v445_v10 = vmul.f32 %v443_v8, %v2874_v0  ;;  %s491_s12 = smax.f32 %s2699_s21, %s2018_s13  ;;  %s2943_s16 = sld [smem:[#allocation4 + $0x9]]  ;;  %v473_v19 = vstv %s471_s17 }
  0x60   : > { %420 = vst.msk [vmem:[#allocation2 + $0x80] sm:$0xff] %vm403_vm0, %v2698_v1  ;;  %421 = vst.msk [vmem:[#allocation2 + $0x88] sm:$0xff] %vm403_vm0, %v2698_v1  ;;  %s485_s15 = smul.f32 0.20507813, %s484_s5  ;;  %s498_s20 = smax.f32 %s2699_s21, %s2019_s27  ;;  %v480_v24 = vstv %s478_s7 }
  0x61   : > { %422 = vst.msk [vmem:[#allocation2 + $0x90] sm:$0xff] %vm403_vm0, %v2698_v1  ;;  %423 = vst.msk [vmem:[#allocation2 + $0x98] sm:$0xff] %vm403_vm0, %v2698_v1  ;;  %v444_v9 = vmul.f32 %v442_v7, %v2911_v2  ;;  %v447_v13 = vmul.f32 %v445_v10, %v2874_v0  ;;  %s2023_s22 = sld [smem:[#allocation4 + $0xa]]  ;;  %s492_s0 = smul.f32 0.24609375, %s491_s12 }
  0x62   : > { %424 = vst.msk [vmem:[#allocation2 + $0xa0] sm:$0xff] %vm403_vm0, %v2698_v1  ;;  %425 = vst.msk [vmem:[#allocation2 + $0xa8] sm:$0xff] %vm403_vm0, %v2698_v1  ;;  %s505_s13 = smax.f32 %s2699_s21, %s2020_s1  ;;  %v487_v29 = vstv %s485_s15  ;;  %s499_s14 = smul.f32 0.20507813, %s498_s20 }
  0x63   : > { %426 = vst.msk [vmem:[#allocation2 + $0xb0] sm:$0xff] %vm403_vm0, %v2698_v1  ;;  %427 = vst.msk [vmem:[#allocation2 + $0xb8] sm:$0xff] %vm403_vm0, %v2698_v1  ;;  %v446_v11 = vmul.f32 %v444_v9, %v2911_v2  ;;  %v449_v20 = vmul.f32 %v447_v13, %v2874_v0  ;;  %v493_v33 = vmul.f32 %v445_v10, %v444_v9  ;;  %v494_v34 = vstv %s492_s0  ;;  %s506_s27 = smul.f32 0.1171875, %s505_s13  ;;  %v569_v10 = vld [vmem:[#allocation3] sm:$0x3] }
  0x64   : > { %428 = vst.msk [vmem:[#allocation2 + $0xc0] sm:$0xff] %vm403_vm0, %v2698_v1  ;;  %429 = vst.msk [vmem:[#allocation2 + $0xc8] sm:$0xff] %vm403_vm0, %v2698_v1  ;;  %s512_s30 = smax.f32 %s2699_s21, %s2939_s6  ;;  %v500_v37 = vmul.f32 %v447_v13, %v442_v7  ;;  %v501_v38 = vstv %s499_s14 }
  0x65   : > { %430 = vst.msk [vmem:[#allocation2 + $0xd0] sm:$0xff] %vm403_vm0, %v2698_v1  ;;  %431 = vst.msk [vmem:[#allocation2 + $0xd8] sm:$0xff] %vm403_vm0, %v2698_v1  ;;  %v448_v12 = vmul.f32 %v446_v11, %v2911_v2  ;;  %v486_v28 = vmul.f32 %v446_v11, %v443_v8  ;;  %v451_v30 = vmul.f32 %v449_v20, %v2874_v0  ;;  %s519_s7 = smax.f32 %s2699_s21, %s2943_s16  ;;  %s513_s26 = smul.f32 0.043945313, %s512_s30  ;;  %v508_v43 = vstv %s506_s27 }
  0x66   : > { %432 = vst.msk [vmem:[#allocation2 + $0xe0] sm:$0xff] %vm403_vm0, %v2698_v1  ;;  %433 = vst.msk [vmem:[#allocation2 + $0xe8] sm:$0xff] %vm403_vm0, %v2698_v1  ;;  %v495_v41 = vmul.f32 %v494_v34, %v493_v33  ;;  %v507_v42 = vmul.f32 %v449_v20, %v2922_v6  ;;  %s520_s17 = smul.f32 0.009765625, %s519_s7  ;;  %v502_v45 = vmul.f32 %v501_v38, %v500_v37 }
  0x67   : > { %434 = vst.msk [vmem:[#allocation2 + $0xf0] sm:$0xff] %vm403_vm0, %v2698_v1  ;;  %435 = vst.msk [vmem:[#allocation2 + $0xf8] sm:$0xff] %vm403_vm0, %v2698_v1  ;;  %v450_v14 = vmul.f32 %v448_v12, %v2911_v2  ;;  %v479_v23 = vmul.f32 %v448_v12, %v441_v5  ;;  %v488_v36 = vmul.f32 %v487_v29, %v486_v28  ;;  %s526_s1 = smax.f32 %s2699_s21, %s2023_s22  ;;  %v515_v47 = vstv %s513_s26 }
  0x68   : > { %v453_v39 = vmul.f32 %v451_v30, %v2874_v0  ;;  %v514_v46 = vmul.f32 %v451_v30, %v2917_v4  ;;  %s527_s6 = smul.f32 0.0009765625, %s526_s1  ;;  %v509_v49 = vmul.f32 %v508_v43, %v507_v42  ;;  %v522_v52 = vstv %s520_s17  ;;  %vm564_vm5 = vmand %vm562_vm1, %vm563_vm2 }
  0x69   : > { %v452_v15 = vmul.f32 %v450_v14, %v2911_v2  ;;  %v472_v16 = vmul.f32 %v450_v14, %v439_v3  ;;  %v481_v32 = vmul.f32 %v480_v24, %v479_v23  ;;  %v534_v3 = vsub.s32 0, %v533_v59  ;;  %vm567_vm6 = vmand %vm565_vm3, %vm566_vm4 }
  0x6a   : > { %v521_v50 = vmul.f32 %v453_v39, %v2911_v2  ;;  %v455_v53 = vmul.f32 %v453_v39, %v2874_v0  ;;  %v516_v55 = vmul.f32 %v515_v47, %v514_v46  ;;  %v528_v56 = vstv %s527_s6  ;;  %vm568_vm7 = vmor %vm567_vm6, %vm564_vm5 }
  0x6b   : > { %v454_v21 = vmul.f32 %v452_v15, %v2911_v2  ;;  %v465_v22 = vmul.f32 %v452_v15, %v2874_v0  ;;  %v474_v27 = vmul.f32 %v473_v19, %v472_v16  ;;  %v538_v4 = vsub.s32 1, %v533_v59 }
  0x6c   : > { %v523_v58 = vmul.f32 %v522_v52, %v521_v50  ;;  %v529_v63 = vmul.f32 %v528_v56, %v455_v53  ;;  %v549_v5 = vunpack.c.0.s8 %v548_v61 }
  0x6d   : > { %v460_v25 = vmul.f32 %v459_v17, %v454_v21  ;;  %v467_v26 = vmul.f32 %v466_v18, %v465_v22 }
  0x6e   : > { %v552_v7 = vsub.s32 %v549_v5, %v533_v59 }
  0x6f   : > { %v468_v31 = vadd.f32 %v467_v26, %v460_v25 }
  0x71   : > { %v475_v35 = vadd.f32 %v474_v27, %v468_v31 }
  0x73   : > { %v482_v40 = vadd.f32 %v481_v32, %v475_v35 }
  0x75   : > { %v489_v44 = vadd.f32 %v488_v36, %v482_v40 }
  0x77   : > { %v496_v48 = vadd.f32 %v495_v41, %v489_v44 }
  0x79   : > { %v503_v54 = vadd.f32 %v502_v45, %v496_v48 }
  0x7b   : > { %v510_v57 = vadd.f32 %v509_v49, %v503_v54 }
  0x7d   : > { %v517_v62 = vadd.f32 %v516_v55, %v510_v57 }
  0x7f   : > { %v524_v1 = vadd.f32 %v523_v58, %v517_v62 }
  0x81   : > { %v530_v6 = vadd.f32 %v529_v63, %v524_v1 }
  0x83   : > { %v535_v0 = vrot.slane %v530_v6, %v534_v3  ;;  %v539_v2 = vrot.slane %v530_v6, %v538_v4 }
  0x85   : > { %v2024_v8 = vpack.c.bf16 %v539_v2, %v535_v0 }
  0x87   : > { %v553_v9 = vrot.slane %v2024_v8, %v552_v7 }
  0x89   : > { %v560_v11 = vrot.slane %v553_v9, %v552_v7 }
  0x8b   : > { %v570_v12 = vsel %vm568_vm7, %v560_v11, %v569_v10 }
  0x8c   : > { %571 = vst [vmem:[#allocation3] sm:$0x3] %v570_v12 }
  0x8d PF: > { %p2025_p10 = scmp.ne.s32.totalorder %s2680_s9, 0 }
  0x8e   : > { %s3419_s21 = sld [smem:[#allocation14_spill]] (!%p2025_p10) }
  0x8f   : > { %574 = sbr.rel (%p2025_p10) target bundleno = 874 (0x36a), region = 68 }
  0x94   : > { %v606_v13 = vld [vmem:[%s3391_s2 + $0x78] sm:$0xff]  ;;  %v605_v14 = vld [vmem:[%s3391_s2 + $0x70] sm:$0xff]  ;;  %v604_v15 = vld [vmem:[%s3391_s2 + $0x68] sm:$0xff]  ;;  %vm790_vm8 = vcmask 523264   ;;  %vm1345_vm9 = vcmask 64512  }
  0x95   : > { %2227 = vmatprep.subr.mxu0 %v606_v13  ;;  %v603_v16 = vld [vmem:[%s3391_s2 + $0x60] sm:$0xff]  ;;  %v602_v18 = vld [vmem:[%s3391_s2 + $0x58] sm:$0xff]  ;;  %v601_v19 = vld [vmem:[%s3391_s2 + $0x50] sm:$0xff] }
  0x96   : > { %2228 = vmatpush3.msra.mxu0 %v606_v13  ;;  %v575_v17 = vld [vmem:[%s2869_s11] sm:$0xff]  ;;  %v600_v20 = vld [vmem:[%s3391_s2 + $0x48] sm:$0xff]  ;;  %v782_v21 = vld [vmem:[%s3393_s4 + $0x38] sm:$0xff] }
  0x97   : > { %2229 = vmatprep.subr.mxu0 %v605_v14  ;;  %2259 = vmatprep.mubr.f32.mxu0 %v575_v17  ;;  %v599_v22 = vld [vmem:[%s3391_s2 + $0x40] sm:$0xff]  ;;  %v781_v23 = vld [vmem:[%s3393_s4 + $0x30] sm:$0xff]  ;;  %v780_v24 = vld [vmem:[%s3393_s4 + $0x28] sm:$0xff] }
  0x98   : > { %2230 = vmatpush3.msra.mxu0 %v605_v14  ;;  %2283 = vmatprep.subr.mxu1 %v782_v21  ;;  %v598_v25 = vld [vmem:[%s3391_s2 + $0x38] sm:$0xff]  ;;  %v779_v26 = vld [vmem:[%s3393_s4 + $0x20] sm:$0xff]  ;;  %v597_v27 = vld [vmem:[%s3391_s2 + $0x30] sm:$0xff] }
  0x99   : > { %2231 = vmatprep.subr.mxu0 %v604_v15  ;;  %2284 = vmatpush3.msra.mxu1 %v782_v21  ;;  %v596_v28 = vld [vmem:[%s3391_s2 + $0x28] sm:$0xff]  ;;  %v595_v29 = vld [vmem:[%s3391_s2 + $0x20] sm:$0xff]  ;;  %v594_v30 = vld [vmem:[%s3391_s2 + $0x18] sm:$0xff] }
  0x9a   : > { %2232 = vmatpush3.msra.mxu0 %v604_v15  ;;  %2285 = vmatprep.subr.mxu1 %v781_v23  ;;  %v593_v31 = vld [vmem:[%s3391_s2 + $0x10] sm:$0xff]  ;;  %v592_v32 = vld [vmem:[%s3391_s2 + $0x8] sm:$0xff]  ;;  %v591_v33 = vld [vmem:[%s3391_s2] sm:$0xff] }
  0x9b   : > { %2233 = vmatprep.subr.mxu0 %v603_v16  ;;  %2286 = vmatpush3.msra.mxu1 %v781_v23  ;;  %v576_v34 = vld [vmem:[%s2869_s11 + $0x8] sm:$0xff]  ;;  %v577_v35 = vld [vmem:[%s2869_s11 + $0x10] sm:$0xff]  ;;  %v578_v36 = vld [vmem:[%s2869_s11 + $0x18] sm:$0xff] }
  0x9c   : > { %2234 = vmatpush3.msra.mxu0 %v603_v16  ;;  %2287 = vmatprep.subr.mxu1 %v780_v24  ;;  %v579_v37 = vld [vmem:[%s2869_s11 + $0x20] sm:$0xff]  ;;  %v580_v38 = vld [vmem:[%s2869_s11 + $0x28] sm:$0xff]  ;;  %v581_v39 = vld [vmem:[%s2869_s11 + $0x30] sm:$0xff] }
  0x9d   : > { %2235 = vmatprep.subr.mxu0 %v602_v18  ;;  %2288 = vmatpush3.msra.mxu1 %v780_v24  ;;  %v582_v40 = vld [vmem:[%s2869_s11 + $0x38] sm:$0xff]  ;;  %v583_v41 = vld [vmem:[%s2869_s11 + $0x40] sm:$0xff]  ;;  %v584_v42 = vld [vmem:[%s2869_s11 + $0x48] sm:$0xff] }
  0x9e   : > { %2236 = vmatpush3.msra.mxu0 %v602_v18  ;;  %2289 = vmatprep.subr.mxu1 %v779_v26  ;;  %v585_v43 = vld [vmem:[%s2869_s11 + $0x50] sm:$0xff]  ;;  %v586_v44 = vld [vmem:[%s2869_s11 + $0x58] sm:$0xff]  ;;  %v587_v45 = vld [vmem:[%s2869_s11 + $0x60] sm:$0xff] }
  0x9f   : > { %2237 = vmatprep.subr.mxu0 %v601_v19  ;;  %2290 = vmatpush3.msra.mxu1 %v779_v26  ;;  %v588_v46 = vld [vmem:[%s2869_s11 + $0x68] sm:$0xff]  ;;  %v589_v47 = vld [vmem:[%s2869_s11 + $0x70] sm:$0xff]  ;;  %v590_v48 = vld [vmem:[%s2869_s11 + $0x78] sm:$0xff] }
  0xa0   : > { %2238 = vmatpush3.msra.mxu0 %v601_v19  ;;  %v778_v49 = vld [vmem:[%s3393_s4 + $0x18] sm:$0xff]  ;;  %v777_v50 = vld [vmem:[%s3393_s4 + $0x10] sm:$0xff]  ;;  %v776_v51 = vld [vmem:[%s3393_s4 + $0x8] sm:$0xff] }
  0xa1   : > { %2239 = vmatprep.subr.mxu0 %v600_v20  ;;  %2291 = vmatprep.subr.mxu1 %v778_v49  ;;  %v775_v52 = vld [vmem:[%s3393_s4] sm:$0xff]  ;;  %v2493_v54 = vld [vmem:[%s2849_s23 + $0x10] ss:$8 sps:$4 sm:$0xff]  }
  0xa2   : > { %2240 = vmatpush3.msra.mxu0 %v600_v20  ;;  %2292 = vmatpush3.msra.mxu1 %v778_v49  ;;  %v2491_v53 = vld [vmem:[%s2849_s23] ss:$8 sps:$4 sm:$0xff]   ;;  %v2507_v55 = vld [vmem:[%s2849_s23 + $0x4] ss:$8 sps:$4 sm:$0xff]   ;;  %v2508_v56 = vld [vmem:[%s2849_s23 + $0x14] ss:$8 sps:$4 sm:$0xff]  }
  0xa3   : > { %2241 = vmatprep.subr.mxu0 %v599_v22  ;;  %2293 = vmatprep.subr.mxu1 %v777_v50  ;;  %v2495_v57 = vld [vmem:[%s2849_s23 + $0x20] ss:$8 sps:$4 sm:$0xff]   ;;  %v2509_v58 = vld [vmem:[%s2849_s23 + $0x24] ss:$8 sps:$4 sm:$0xff]   ;;  %v2497_v59 = vld [vmem:[%s2849_s23 + $0x30] ss:$8 sps:$4 sm:$0xff]  }
  0xa4   : > { %2242 = vmatpush3.msra.mxu0 %v599_v22  ;;  %2294 = vmatpush3.msra.mxu1 %v777_v50  ;;  %v2510_v60 = vld [vmem:[%s2849_s23 + $0x34] ss:$8 sps:$4 sm:$0xff]   ;;  %v2499_v61 = vld [vmem:[%s2849_s23 + $0x40] ss:$8 sps:$4 sm:$0xff]   ;;  %v2511_v62 = vld [vmem:[%s2849_s23 + $0x44] ss:$8 sps:$4 sm:$0xff]  }
  0xa5   : > { %2243 = vmatprep.subr.mxu0 %v598_v25  ;;  %2295 = vmatprep.subr.mxu1 %v776_v51  ;;  %v2501_v63 = vld [vmem:[%s2849_s23 + $0x50] ss:$8 sps:$4 sm:$0xff]   ;;  %v2512_v1 = vld [vmem:[%s2849_s23 + $0x54] ss:$8 sps:$4 sm:$0xff]   ;;  %v2503_v3 = vld [vmem:[%s2849_s23 + $0x60] ss:$8 sps:$4 sm:$0xff]  }
  0xa6   : > { %2244 = vmatpush3.msra.mxu0 %v598_v25  ;;  %2296 = vmatpush3.msra.mxu1 %v776_v51  ;;  %v2513_v4 = vld [vmem:[%s2849_s23 + $0x64] ss:$8 sps:$4 sm:$0xff]   ;;  %v2505_v5 = vld [vmem:[%s2849_s23 + $0x70] ss:$8 sps:$4 sm:$0xff]   ;;  %v2514_v6 = vld [vmem:[%s2849_s23 + $0x74] ss:$8 sps:$4 sm:$0xff]  }
  0xa7   : > { %2245 = vmatprep.subr.mxu0 %v597_v27  ;;  %2297 = vmatprep.subr.mxu1 %v775_v52  ;;  %v2026_v0 = vld [vmem:[%s3392_s3] ss:$0 sm:$0xff] }
  0xa8   : > { %2246 = vmatpush3.msra.mxu0 %v597_v27  ;;  %2298 = vmatpush3.msra.mxu1 %v775_v52 }
  0xa9   : > { %2247 = vmatprep.subr.mxu0 %v596_v28  ;;  %1120 = vxpose.xlu0.c.b16.start [1/8] %v2491_v53, 128 }
  0xaa   : > { %2248 = vmatpush3.msra.mxu0 %v596_v28  ;;  %1136 = vxpose.xlu1.c.b16.start [1/8] %v2507_v55, 128 }
  0xab   : > { %2249 = vmatprep.subr.mxu0 %v595_v29 }
  0xac   : > { %2250 = vmatpush3.msra.mxu0 %v595_v29 }
  0xad   : > { %2251 = vmatprep.subr.mxu0 %v594_v30  ;;  %1121 = vxpose.xlu0.c.b16.cont [2/8] %v2493_v54, 128 }
  0xae   : > { %2252 = vmatpush3.msra.mxu0 %v594_v30  ;;  %1137 = vxpose.xlu1.c.b16.cont [2/8] %v2508_v56, 128 }
  0xaf   : > { %2253 = vmatprep.subr.mxu0 %v593_v31 }
  0xb0   : > { %2254 = vmatpush3.msra.mxu0 %v593_v31 }
  0xb1   : > { %2255 = vmatprep.subr.mxu0 %v592_v32  ;;  %1122 = vxpose.xlu0.c.b16.cont [3/8] %v2495_v57, 128 }
  0xb2   : > { %2256 = vmatpush3.msra.mxu0 %v592_v32  ;;  %1138 = vxpose.xlu1.c.b16.cont [3/8] %v2509_v58, 128 }
  0xb3   : > { %2257 = vmatprep.subr.mxu0 %v591_v33 }
  0xb4   : > { %2258 = vmatpush3.msra.mxu0 %v591_v33 }
  0xb5   : > { %2260 = vmatmul.mubr.f32.vlgmr.msra.gmra.mxu0 %v576_v34  ;;  %1123 = vxpose.xlu0.c.b16.cont [4/8] %v2497_v59, 128 }
  0xb6   : > { %2262 = vmatprep.mubr.f32.mxu0 %v577_v35  ;;  %1139 = vxpose.xlu1.c.b16.cont [4/8] %v2510_v60, 128 }
  0xb9   : > { %2263 = vmatmul.mubr.f32.gmra.mxu0 %v578_v36  ;;  %1124 = vxpose.xlu0.c.b16.cont [5/8] %v2499_v61, 128 }
  0xba   : > { %2265 = vmatprep.mubr.f32.mxu0 %v579_v37  ;;  %1140 = vxpose.xlu1.c.b16.cont [5/8] %v2511_v62, 128 }
  0xbd   : > { %2266 = vmatmul.mubr.f32.gmra.mxu0 %v580_v38  ;;  %1125 = vxpose.xlu0.c.b16.cont [6/8] %v2501_v63, 128 }
  0xbe   : > { %2268 = vmatprep.mubr.f32.mxu0 %v581_v39  ;;  %1141 = vxpose.xlu1.c.b16.cont [6/8] %v2512_v1, 128 }
  0xc1   : > { %2269 = vmatmul.mubr.f32.gmra.mxu0 %v582_v40  ;;  %1126 = vxpose.xlu0.c.b16.cont [7/8] %v2503_v3, 128 }
  0xc2   : > { %2271 = vmatprep.mubr.f32.mxu0 %v583_v41  ;;  %1142 = vxpose.xlu1.c.b16.cont [7/8] %v2513_v4, 128 }
  0xc5   : > { %2272 = vmatmul.mubr.f32.gmra.mxu0 %v584_v42  ;;  %1127 = vxpose.xlu0.c.b16.end [8/8] %v2505_v5, 128 }
  0xc6   : > { %2274 = vmatprep.mubr.f32.mxu0 %v585_v43  ;;  %1143 = vxpose.xlu1.c.b16.end [8/8] %v2514_v6, 128 }
  0xc9   : > { %2275 = vmatmul.mubr.f32.gmra.mxu0 %v586_v44 }
  0xca   : > { %2277 = vmatprep.mubr.f32.mxu0 %v587_v45 }
  0xcd   : > { %2278 = vmatmul.mubr.f32.gmra.mxu0 %v588_v46 }
  0xce   : > { %2280 = vmatprep.mubr.f32.mxu0 %v589_v47 }
  0xd1   : > { %2281 = vmatmul.mubr.f32.gmra.mxu0 %v590_v48 }
 0x10b   : > { %v1128_v54 = vpop.trf.xlu0 }
 0x10c   : > { %2339 = vmatprep.mubr.bf16.mxu0 %v1128_v54 }
 0x10f   : > { %v3085_v55 = vpop.trf.xlu0 }
 0x113   : > { %v3087_v56 = vpop.trf.xlu0 }
 0x117   : > { %v3089_v57 = vpop.trf.xlu0 }
 0x11b   : > { %v3091_v58 = vpop.trf.xlu0 }
 0x11f   : > { %v3093_v59 = vpop.trf.xlu0 }
 0x123   : > { %v1134_v60 = vpop.trf.xlu0 }
 0x175   : > { %v2261_v2 = vpop.f32.mrf.mxu0 }
 0x176   : > { %v686_v7 = vadd.f32 %v2261_v2, %v2026_v0 }
 0x177   : > { %v680_v8 = vpop.f32.mrf.mxu0 }
 0x178   : > { %v681_v9 = vadd.f32 %v2026_v0, %v680_v8  ;;  %v760_v12 = vmax.f32 %v686_v7, 0.0 }
 0x179   : > { %v2264_v10 = vpop.f32.mrf.mxu0 }
 0x17a   : > { %v759_v11 = vmax.f32 %v681_v9, 0.0  ;;  %v696_v13 = vadd.f32 %v2264_v10, %v2026_v0 }
 0x17b   : > { %v690_v14 = vpop.f32.mrf.mxu0 }
 0x17c   : > { %v691_v15 = vadd.f32 %v2026_v0, %v690_v14  ;;  %2299 = vmatprep.mubr.msk.f32.mxu1 %vm790_vm8, %v759_v11  ;;  %v762_v18 = vmax.f32 %v696_v13, 0.0 }
 0x17d   : > { %v2267_v16 = vpop.f32.mrf.mxu0  ;;  %2300 = vmatmul.mubr.msk.f32.vlgmr.msra.gmra.mxu1 %vm790_vm8, %v760_v12  ;;  %v2027_v12 = vld [vmem:[%s3419_s21] ss:$0 sm:$0xff] }
 0x17e   : > { %v761_v17 = vmax.f32 %v691_v15, 0.0  ;;  %v706_v19 = vadd.f32 %v2267_v16, %v2026_v0 }
 0x17f   : > { %v700_v20 = vpop.f32.mrf.mxu0 }
 0x180   : > { %v701_v21 = vadd.f32 %v2026_v0, %v700_v20  ;;  %2302 = vmatprep.mubr.msk.f32.mxu1 %vm790_vm8, %v761_v17  ;;  %v764_v24 = vmax.f32 %v706_v19, 0.0 }
 0x181   : > { %v2270_v22 = vpop.f32.mrf.mxu0  ;;  %2303 = vmatmul.mubr.msk.f32.gmra.mxu1 %vm790_vm8, %v762_v18 }
 0x182   : > { %v763_v23 = vmax.f32 %v701_v21, 0.0  ;;  %v716_v25 = vadd.f32 %v2270_v22, %v2026_v0 }
 0x183   : > { %v710_v26 = vpop.f32.mrf.mxu0 }
 0x184   : > { %v711_v27 = vadd.f32 %v2026_v0, %v710_v26  ;;  %2305 = vmatprep.mubr.msk.f32.mxu1 %vm790_vm8, %v763_v23  ;;  %v766_v30 = vmax.f32 %v716_v25, 0.0 }
 0x185   : > { %v2273_v28 = vpop.f32.mrf.mxu0  ;;  %2306 = vmatmul.mubr.msk.f32.gmra.mxu1 %vm790_vm8, %v764_v24 }
 0x186   : > { %v765_v29 = vmax.f32 %v711_v27, 0.0  ;;  %v726_v31 = vadd.f32 %v2273_v28, %v2026_v0 }
 0x187   : > { %v720_v32 = vpop.f32.mrf.mxu0 }
 0x188   : > { %v721_v33 = vadd.f32 %v2026_v0, %v720_v32  ;;  %2308 = vmatprep.mubr.msk.f32.mxu1 %vm790_vm8, %v765_v29  ;;  %v768_v36 = vmax.f32 %v726_v31, 0.0 }
 0x189   : > { %v2276_v34 = vpop.f32.mrf.mxu0  ;;  %2309 = vmatmul.mubr.msk.f32.gmra.mxu1 %vm790_vm8, %v766_v30 }
 0x18a   : > { %v767_v35 = vmax.f32 %v721_v33, 0.0  ;;  %v736_v37 = vadd.f32 %v2276_v34, %v2026_v0  ;;  %v1144_v34 = vpop.trf.xlu1 }
 0x18b   : > { %v730_v38 = vpop.f32.mrf.mxu0 }
 0x18c   : > { %v731_v39 = vadd.f32 %v2026_v0, %v730_v38  ;;  %2311 = vmatprep.mubr.msk.f32.mxu1 %vm790_vm8, %v767_v35  ;;  %v770_v42 = vmax.f32 %v736_v37, 0.0 }
 0x18d   : > { %v2279_v40 = vpop.f32.mrf.mxu0  ;;  %2312 = vmatmul.mubr.msk.f32.gmra.mxu1 %vm790_vm8, %v768_v36 }
 0x18e   : > { %v769_v41 = vmax.f32 %v731_v39, 0.0  ;;  %v746_v43 = vadd.f32 %v2279_v40, %v2026_v0  ;;  %v1145_v39 = vpop.trf.xlu1  ;;  %v1135_v40 = vpop.trf.xlu0 }
 0x18f   : > { %v740_v44 = vpop.f32.mrf.mxu0 }
 0x190   : > { %v741_v45 = vadd.f32 %v2026_v0, %v740_v44  ;;  %2314 = vmatprep.mubr.msk.f32.mxu1 %vm790_vm8, %v769_v41  ;;  %v772_v48 = vmax.f32 %v746_v43, 0.0 }
 0x191   : > { %v2282_v46 = vpop.f32.mrf.mxu0  ;;  %2315 = vmatmul.mubr.msk.f32.gmra.mxu1 %vm790_vm8, %v770_v42 }
 0x192   : > { %v771_v47 = vmax.f32 %v741_v45, 0.0  ;;  %v756_v49 = vadd.f32 %v2282_v46, %v2026_v0  ;;  %v1146_v41 = vpop.trf.xlu1 }
 0x193   : > { %v750_v50 = vpop.f32.mrf.mxu0 }
 0x194   : > { %v751_v51 = vadd.f32 %v2026_v0, %v750_v50  ;;  %2317 = vmatprep.mubr.msk.f32.mxu1 %vm790_vm8, %v771_v47  ;;  %v774_v53 = vmax.f32 %v756_v49, 0.0  ;;  %v986_v47 = vld [vmem:[#allocation2 + $0x10] sm:$0xff] }
 0x195   : > { %2318 = vmatmul.mubr.msk.f32.gmra.mxu1 %vm790_vm8, %v772_v48  ;;  %v998_v48 = vld [vmem:[#allocation2 + $0x70] sm:$0xff] }
 0x196   : > { %v773_v52 = vmax.f32 %v751_v51, 0.0  ;;  %v1147_v42 = vpop.trf.xlu1  ;;  %v984_v51 = vld [vmem:[#allocation2] sm:$0xff] }
 0x198   : > { %2320 = vmatprep.mubr.msk.f32.mxu1 %vm790_vm8, %v773_v52  ;;  %v996_v52 = vld [vmem:[#allocation2 + $0x60] sm:$0xff] }
 0x199   : > { %2321 = vmatmul.mubr.msk.f32.gmra.mxu1 %vm790_vm8, %v774_v53 }
 0x19a   : > { %2351 = vmatprep.mubr.bf16.mxu1 %v1134_v60  ;;  %v1148_v43 = vpop.trf.xlu1 }
 0x19e   : > { %v1149_v44 = vpop.trf.xlu1 }
 0x1a2   : > { %v1150_v45 = vpop.trf.xlu1 }
 0x1a6   : > { %v1151_v46 = vpop.trf.xlu1 }
 0x23d   : > { %v3095_v61 = vpop.f32.mrf.mxu1 }
 0x23e   : > { %v911_v37 = vadd.f32 %v3095_v61, %v2027_v12 }
 0x23f   : > { %v905_v62 = vpop.f32.mrf.mxu1 }
 0x240   : > { %v906_v35 = vadd.f32 %v2027_v12, %v905_v62 }
 0x241   : > { %v2304_v63 = vpop.f32.mrf.mxu1 }
 0x242   : > { %v921_v33 = vadd.f32 %v2304_v63, %v2027_v12  ;;  %v1032_v38 = vpack.c.bf16 %v911_v37, %v906_v35  ;;  %v985_v63 = vld [vmem:[#allocation2 + $0x8] sm:$0xff]  ;;  %v992_v35 = vld [vmem:[#allocation2 + $0x40] sm:$0xff] }
 0x243   : > { %v915_v1 = vpop.f32.mrf.mxu1 }
 0x244   : > { %v916_v31 = vadd.f32 %v2027_v12, %v915_v1  ;;  %v997_v1 = vld [vmem:[#allocation2 + $0x68] sm:$0xff] }
 0x245   : > { %v2307_v3 = vpop.f32.mrf.mxu1 }
 0x246   : > { %v931_v30 = vadd.f32 %v2307_v3, %v2027_v12  ;;  %v1033_v36 = vpack.c.bf16 %v921_v33, %v916_v31 }
 0x247   : > { %v925_v4 = vpop.f32.mrf.mxu1 }
 0x248   : > { %v926_v28 = vadd.f32 %v2027_v12, %v925_v4 }
 0x249   : > { %v2310_v5 = vpop.f32.mrf.mxu1 }
 0x24a   : > { %v941_v27 = vadd.f32 %v2310_v5, %v2027_v12  ;;  %v1034_v32 = vpack.c.bf16 %v931_v30, %v926_v28  ;;  %v1006_v30 = vld [vmem:[#allocation2 + $0xb0] sm:$0xff] }
 0x24b   : > { %v935_v6 = vpop.f32.mrf.mxu1 }
 0x24c   : > { %v936_v25 = vadd.f32 %v2027_v12, %v935_v6 }
 0x24d   : > { %v2313_v0 = vpop.f32.mrf.mxu1 }
 0x24e   : > { %v951_v24 = vadd.f32 %v2313_v0, %v2027_v12  ;;  %v1035_v29 = vpack.c.bf16 %v941_v27, %v936_v25  ;;  %v990_v0 = vld [vmem:[#allocation2 + $0x30] sm:$0xff] }
 0x24f   : > { %v945_v2 = vpop.f32.mrf.mxu1 }
 0x250   : > { %v946_v22 = vadd.f32 %v2027_v12, %v945_v2  ;;  %v1002_v2 = vld [vmem:[#allocation2 + $0x90] sm:$0xff] }
 0x251   : > { %v2316_v7 = vpop.f32.mrf.mxu1 }
 0x252   : > { %v961_v21 = vadd.f32 %v2316_v7, %v2027_v12  ;;  %v1036_v26 = vpack.c.bf16 %v951_v24, %v946_v22  ;;  %v1001_v24 = vld [vmem:[#allocation2 + $0x88] sm:$0xff] }
 0x253   : > { %v955_v8 = vpop.f32.mrf.mxu1 }
 0x254   : > { %v956_v19 = vadd.f32 %v2027_v12, %v955_v8 }
 0x255   : > { %v2319_v9 = vpop.f32.mrf.mxu1 }
 0x256   : > { %v971_v17 = vadd.f32 %v2319_v9, %v2027_v12  ;;  %v1037_v23 = vpack.c.bf16 %v961_v21, %v956_v19 }
 0x257   : > { %v965_v10 = vpop.f32.mrf.mxu1 }
 0x258   : > { %v966_v14 = vadd.f32 %v2027_v12, %v965_v10 }
 0x259   : > { %v2322_v11 = vpop.f32.mrf.mxu1 }
 0x25a   : > { %v981_v15 = vadd.f32 %v2322_v11, %v2027_v12  ;;  %v1038_v20 = vpack.c.bf16 %v971_v17, %v966_v14  ;;  %v988_v11 = vld [vmem:[#allocation2 + $0x20] sm:$0xff]  ;;  %v991_v17 = vld [vmem:[#allocation2 + $0x38] sm:$0xff] }
 0x25b   : > { %v975_v13 = vpop.f32.mrf.mxu1 }
 0x25c   : > { %v976_v16 = vadd.f32 %v2027_v12, %v975_v13  ;;  %v1000_v12 = vld [vmem:[#allocation2 + $0x80] sm:$0xff] }
 0x25e   : > { %v1039_v18 = vpack.c.bf16 %v981_v15, %v976_v16 }
 0x260   : > { %2323 = vmatprep.subr.bf16.mxu0 %v1039_v18  ;;  %2371 = vmatprep.subr.bf16.mxu1 %v1039_v18 }
 0x261   : > { %2324 = vmatpush3.bf16.msra.mxu0 %v1039_v18  ;;  %2379 = vmatpush3.bf16.msra.mxu1 %v1039_v18  ;;  %v1003_v18 = vld [vmem:[#allocation2 + $0x98] sm:$0xff] }
 0x262   : > { %2325 = vmatprep.subr.bf16.mxu0 %v1038_v20  ;;  %2372 = vmatprep.subr.bf16.mxu1 %v1038_v20 }
 0x265   : > { %2326 = vmatpush3.bf16.msra.mxu0 %v1038_v20  ;;  %2380 = vmatpush3.bf16.msra.mxu1 %v1038_v20 }
 0x266   : > { %2327 = vmatprep.subr.bf16.mxu0 %v1037_v23  ;;  %2373 = vmatprep.subr.bf16.mxu1 %v1037_v23 }
 0x269   : > { %2328 = vmatpush3.bf16.msra.mxu0 %v1037_v23  ;;  %2381 = vmatpush3.bf16.msra.mxu1 %v1037_v23  ;;  %v989_v23 = vld [vmem:[#allocation2 + $0x28] sm:$0xff] }
 0x26a   : > { %2329 = vmatprep.subr.bf16.mxu0 %v1036_v26  ;;  %2374 = vmatprep.subr.bf16.mxu1 %v1036_v26 }
 0x26d   : > { %2330 = vmatpush3.bf16.msra.mxu0 %v1036_v26  ;;  %2382 = vmatpush3.bf16.msra.mxu1 %v1036_v26 }
 0x26e   : > { %2331 = vmatprep.subr.bf16.mxu0 %v1035_v29  ;;  %2375 = vmatprep.subr.bf16.mxu1 %v1035_v29 }
 0x271   : > { %2332 = vmatpush3.bf16.msra.mxu0 %v1035_v29  ;;  %2383 = vmatpush3.bf16.msra.mxu1 %v1035_v29  ;;  %v994_v29 = vld [vmem:[#allocation2 + $0x50] sm:$0xff] }
 0x272   : > { %2333 = vmatprep.subr.bf16.mxu0 %v1034_v32  ;;  %2376 = vmatprep.subr.bf16.mxu1 %v1034_v32 }
 0x275   : > { %2334 = vmatpush3.bf16.msra.mxu0 %v1034_v32  ;;  %2384 = vmatpush3.bf16.msra.mxu1 %v1034_v32 }
 0x276   : > { %2335 = vmatprep.subr.bf16.mxu0 %v1033_v36  ;;  %2377 = vmatprep.subr.bf16.mxu1 %v1033_v36 }
 0x279   : > { %2336 = vmatpush3.bf16.msra.mxu0 %v1033_v36  ;;  %2385 = vmatpush3.bf16.msra.mxu1 %v1033_v36  ;;  %v1004_v36 = vld [vmem:[#allocation2 + $0xa0] sm:$0xff] }
 0x27a   : > { %2337 = vmatprep.subr.bf16.mxu0 %v1032_v38  ;;  %2378 = vmatprep.subr.bf16.mxu1 %v1032_v38 }
 0x27d   : > { %2338 = vmatpush3.bf16.msra.mxu0 %v1032_v38  ;;  %2386 = vmatpush3.bf16.msra.mxu1 %v1032_v38 }
 0x280   : > { %2340 = vmatmul.mubr.bf16.vlgmr.msra.gmra.mxu0 %v3085_v55  ;;  %2352 = vmatmul.mubr.bf16.vlgmr.msra.gmra.mxu1 %v1135_v40 }
 0x281   : > { %2343 = vmatprep.mubr.bf16.mxu0 %v3087_v56  ;;  %2355 = vmatprep.mubr.bf16.mxu1 %v1144_v34 }
 0x288   : > { %2344 = vmatmul.mubr.bf16.gmra.mxu0 %v3089_v57  ;;  %2356 = vmatmul.mubr.bf16.gmra.mxu1 %v1145_v39  ;;  %v987_v57 = vld [vmem:[#allocation2 + $0x18] sm:$0xff] }
 0x289   : > { %2347 = vmatprep.mubr.bf16.mxu0 %v3091_v58  ;;  %2359 = vmatprep.mubr.bf16.mxu1 %v1146_v41  ;;  %v999_v58 = vld [vmem:[#allocation2 + $0x78] sm:$0xff] }
 0x28a   : > { %v995_v41 = vld [vmem:[#allocation2 + $0x58] sm:$0xff] }
 0x290   : > { %2348 = vmatmul.mubr.bf16.gmra.mxu0 %v3093_v59  ;;  %2360 = vmatmul.mubr.bf16.gmra.mxu1 %v1147_v42  ;;  %v1007_v42 = vld [vmem:[#allocation2 + $0xb8] sm:$0xff] }
 0x291   : > { %2363 = vmatprep.mubr.bf16.mxu1 %v1148_v43 }
 0x298   : > { %2364 = vmatmul.mubr.bf16.gmra.mxu1 %v1149_v44 }
 0x299   : > { %2367 = vmatprep.mubr.bf16.mxu1 %v1150_v45 }
 0x2a0   : > { %2368 = vmatmul.mubr.bf16.gmra.mxu1 %v1151_v46 }
 0x340   : > { %v2341_v49 = vpop.f32.mrf.mxu0  ;;  %v2353_v50 = vpop.f32.mrf.mxu1 }
 0x341   : > { %v1315_v53 = vadd.f32 %v2341_v49, %v986_v47  ;;  %v1327_v54 = vadd.f32 %v2353_v50, %v998_v48  ;;  %v993_v47 = vld [vmem:[#allocation2 + $0x48] sm:$0xff] }
 0x342   : > { %v1186_v55 = vpop.f32.mrf.mxu0  ;;  %v1234_v56 = vpop.f32.mrf.mxu1  ;;  %v1005_v48 = vld [vmem:[#allocation2 + $0xa8] sm:$0xff] }
 0x343   : > { %1348 = vst.msk [vmem:[#allocation2 + $0x10] sm:$0xff] %vm1345_vm9, %v1315_v53  ;;  %1360 = vst.msk [vmem:[#allocation2 + $0x70] sm:$0xff] %vm1345_vm9, %v1327_v54  ;;  %v1313_v59 = vadd.f32 %v1186_v55, %v984_v51  ;;  %v1325_v60 = vadd.f32 %v1234_v56, %v996_v52  ;;  %v1010_v53 = vld [vmem:[#allocation2 + $0xd0] sm:$0xff] }
 0x344   : > { %v2342_v61 = vpop.f32.mrf.mxu0  ;;  %v2354_v62 = vpop.f32.mrf.mxu1 }
 0x345   : > { %1346 = vst.msk [vmem:[#allocation2] sm:$0xff] %vm1345_vm9, %v1313_v59  ;;  %1358 = vst.msk [vmem:[#allocation2 + $0x60] sm:$0xff] %vm1345_vm9, %v1325_v60  ;;  %v1316_v3 = vadd.f32 %v2342_v61, %v987_v57  ;;  %v1328_v4 = vadd.f32 %v2354_v62, %v999_v58  ;;  %v1008_v57 = vld [vmem:[#allocation2 + $0xc0] sm:$0xff]  ;;  %v1011_v60 = vld [vmem:[#allocation2 + $0xd8] sm:$0xff] }
 0x346   : > { %v1189_v5 = vpop.f32.mrf.mxu0  ;;  %v1237_v6 = vpop.f32.mrf.mxu1 }
 0x347   : > { %1349 = vst.msk [vmem:[#allocation2 + $0x18] sm:$0xff] %vm1345_vm9, %v1316_v3  ;;  %1361 = vst.msk [vmem:[#allocation2 + $0x78] sm:$0xff] %vm1345_vm9, %v1328_v4  ;;  %v1314_v7 = vadd.f32 %v1189_v5, %v985_v63  ;;  %v1326_v8 = vadd.f32 %v1237_v6, %v997_v1  ;;  %v1009_v63 = vld [vmem:[#allocation2 + $0xc8] sm:$0xff]  ;;  %v1014_v4 = vld [vmem:[#allocation2 + $0xf0] sm:$0xff] }
 0x348   : > { %v2345_v9 = vpop.f32.mrf.mxu0  ;;  %v2357_v10 = vpop.f32.mrf.mxu1 }
 0x349   : > { %1347 = vst.msk [vmem:[#allocation2 + $0x8] sm:$0xff] %vm1345_vm9, %v1314_v7  ;;  %1359 = vst.msk [vmem:[#allocation2 + $0x68] sm:$0xff] %vm1345_vm9, %v1326_v8  ;;  %v1319_v13 = vadd.f32 %v2345_v9, %v990_v0  ;;  %v1331_v14 = vadd.f32 %v2357_v10, %v1002_v2  ;;  %v1012_v0 = vld [vmem:[#allocation2 + $0xe0] sm:$0xff]  ;;  %v1015_v8 = vld [vmem:[#allocation2 + $0xf8] sm:$0xff] }
 0x34a   : > { %v1202_v15 = vpop.f32.mrf.mxu0  ;;  %v1250_v16 = vpop.f32.mrf.mxu1 }
 0x34b   : > { %1352 = vst.msk [vmem:[#allocation2 + $0x30] sm:$0xff] %vm1345_vm9, %v1319_v13  ;;  %1364 = vst.msk [vmem:[#allocation2 + $0x90] sm:$0xff] %vm1345_vm9, %v1331_v14  ;;  %v1317_v19 = vadd.f32 %v1202_v15, %v988_v11  ;;  %v1329_v20 = vadd.f32 %v1250_v16, %v1000_v12  ;;  %v1013_v11 = vld [vmem:[#allocation2 + $0xe8] sm:$0xff] }
 0x34c   : > { %v2346_v21 = vpop.f32.mrf.mxu0  ;;  %v2358_v22 = vpop.f32.mrf.mxu1 }
 0x34d   : > { %1350 = vst.msk [vmem:[#allocation2 + $0x20] sm:$0xff] %vm1345_vm9, %v1317_v19  ;;  %1362 = vst.msk [vmem:[#allocation2 + $0x80] sm:$0xff] %vm1345_vm9, %v1329_v20  ;;  %v1320_v25 = vadd.f32 %v2346_v21, %v991_v17  ;;  %v1332_v26 = vadd.f32 %v2358_v22, %v1003_v18 }
 0x34e   : > { %v1205_v27 = vpop.f32.mrf.mxu0  ;;  %v1253_v28 = vpop.f32.mrf.mxu1 }
 0x34f   : > { %1353 = vst.msk [vmem:[#allocation2 + $0x38] sm:$0xff] %vm1345_vm9, %v1320_v25  ;;  %1365 = vst.msk [vmem:[#allocation2 + $0x98] sm:$0xff] %vm1345_vm9, %v1332_v26  ;;  %v1318_v31 = vadd.f32 %v1205_v27, %v989_v23  ;;  %v1330_v32 = vadd.f32 %v1253_v28, %v1001_v24 }
 0x350   : > { %v2349_v33 = vpop.f32.mrf.mxu0  ;;  %v2361_v34 = vpop.f32.mrf.mxu1 }
 0x351   : > { %1351 = vst.msk [vmem:[#allocation2 + $0x28] sm:$0xff] %vm1345_vm9, %v1318_v31  ;;  %1363 = vst.msk [vmem:[#allocation2 + $0x88] sm:$0xff] %vm1345_vm9, %v1330_v32  ;;  %v1323_v37 = vadd.f32 %v2349_v33, %v994_v29  ;;  %v1335_v38 = vadd.f32 %v2361_v34, %v1006_v30 }
 0x352   : > { %v1218_v39 = vpop.f32.mrf.mxu0  ;;  %v1266_v40 = vpop.f32.mrf.mxu1 }
 0x353   : > { %1356 = vst.msk [vmem:[#allocation2 + $0x50] sm:$0xff] %vm1345_vm9, %v1323_v37  ;;  %1368 = vst.msk [vmem:[#allocation2 + $0xb0] sm:$0xff] %vm1345_vm9, %v1335_v38  ;;  %v1321_v43 = vadd.f32 %v1218_v39, %v992_v35  ;;  %v1333_v44 = vadd.f32 %v1266_v40, %v1004_v36 }
 0x354   : > { %v2350_v45 = vpop.f32.mrf.mxu0  ;;  %v2362_v46 = vpop.f32.mrf.mxu1 }
 0x355   : > { %1354 = vst.msk [vmem:[#allocation2 + $0x40] sm:$0xff] %vm1345_vm9, %v1321_v43  ;;  %1366 = vst.msk [vmem:[#allocation2 + $0xa0] sm:$0xff] %vm1345_vm9, %v1333_v44  ;;  %v1324_v49 = vadd.f32 %v2350_v45, %v995_v41  ;;  %v1336_v50 = vadd.f32 %v2362_v46, %v1007_v42 }
 0x356   : > { %v1221_v51 = vpop.f32.mrf.mxu0  ;;  %v1269_v52 = vpop.f32.mrf.mxu1 }
 0x357   : > { %1357 = vst.msk [vmem:[#allocation2 + $0x58] sm:$0xff] %vm1345_vm9, %v1324_v49  ;;  %1369 = vst.msk [vmem:[#allocation2 + $0xb8] sm:$0xff] %vm1345_vm9, %v1336_v50  ;;  %v1322_v54 = vadd.f32 %v1221_v51, %v993_v47  ;;  %v1334_v55 = vadd.f32 %v1269_v52, %v1005_v48 }
 0x358   : > { %v2365_v56 = vpop.f32.mrf.mxu1 }
 0x359   : > { %1355 = vst.msk [vmem:[#allocation2 + $0x48] sm:$0xff] %vm1345_vm9, %v1322_v54  ;;  %1367 = vst.msk [vmem:[#allocation2 + $0xa8] sm:$0xff] %vm1345_vm9, %v1334_v55  ;;  %v1339_v58 = vadd.f32 %v2365_v56, %v1010_v53 }
 0x35a   : > { %v1282_v59 = vpop.f32.mrf.mxu1 }
 0x35b   : > { %1372 = vst.msk [vmem:[#allocation2 + $0xd0] sm:$0xff] %vm1345_vm9, %v1339_v58  ;;  %v1337_v61 = vadd.f32 %v1282_v59, %v1008_v57 }
 0x35c   : > { %v2366_v62 = vpop.f32.mrf.mxu1 }
 0x35d   : > { %1370 = vst.msk [vmem:[#allocation2 + $0xc0] sm:$0xff] %vm1345_vm9, %v1337_v61  ;;  %v1340_v1 = vadd.f32 %v2366_v62, %v1011_v60 }
 0x35e   : > { %v1285_v3 = vpop.f32.mrf.mxu1 }
 0x35f   : > { %1373 = vst.msk [vmem:[#allocation2 + $0xd8] sm:$0xff] %vm1345_vm9, %v1340_v1  ;;  %v1338_v5 = vadd.f32 %v1285_v3, %v1009_v63 }
 0x360   : > { %v2369_v6 = vpop.f32.mrf.mxu1 }
 0x361   : > { %1371 = vst.msk [vmem:[#allocation2 + $0xc8] sm:$0xff] %vm1345_vm9, %v1338_v5  ;;  %v1343_v2 = vadd.f32 %v2369_v6, %v1014_v4 }
 0x362   : > { %v1298_v7 = vpop.f32.mrf.mxu1 }
 0x363   : > { %1376 = vst.msk [vmem:[#allocation2 + $0xf0] sm:$0xff] %vm1345_vm9, %v1343_v2  ;;  %v1341_v9 = vadd.f32 %v1298_v7, %v1012_v0 }
 0x364   : > { %v2370_v10 = vpop.f32.mrf.mxu1 }
 0x365   : > { %1374 = vst.msk [vmem:[#allocation2 + $0xe0] sm:$0xff] %vm1345_vm9, %v1341_v9  ;;  %v1344_v12 = vadd.f32 %v2370_v10, %v1015_v8 }
 0x366   : > { %v1301_v13 = vpop.f32.mrf.mxu1 }
 0x367   : > { %1377 = vst.msk [vmem:[#allocation2 + $0xf8] sm:$0xff] %vm1345_vm9, %v1344_v12  ;;  %v1342_v14 = vadd.f32 %v1301_v13, %v1013_v11 }
 0x369   : > { %1375 = vst.msk [vmem:[#allocation2 + $0xe8] sm:$0xff] %vm1345_vm9, %v1342_v14 }
 0x36a PF: > { %p2060_p11 = scmp.ne.s32.totalorder %s2680_s9, 1 }
 0x36c   : > { %1381 = sbr.rel (%p2060_p11) target bundleno = 1465 (0x5b9), region = 72 }
 0x371   : > { %v1488_v15 = vld [vmem:[#allocation2 + $0xf0] sm:$0xff]  ;;  %v1489_v16 = vld [vmem:[#allocation2 + $0xf8] sm:$0xff]  ;;  %v1411_v18 = vlaneseq  ;;  %v1486_v21 = vld [vmem:[#allocation2 + $0xe0] sm:$0xff]  ;;  %v2701_v23 = vmov 1966171168   ;;  %vm1683_vm10 = vcmask 64512  }
 0x372   : > { %v1472_v17 = vld [vmem:[#allocation2 + $0x70] sm:$0xff]  ;;  %v1505_v19 = vpack.c.bf16 %v1489_v16, %v1488_v15  ;;  %v1473_v20 = vld [vmem:[#allocation2 + $0x78] sm:$0xff]  ;;  %v1487_v22 = vld [vmem:[#allocation2 + $0xe8] sm:$0xff]  ;;  %v1409_v24 = vunpack.c.l.s4 %v2701_v23 }
 0x373   : > { %v1497_v25 = vpack.c.bf16 %v1473_v20, %v1472_v17  ;;  %v1504_v26 = vpack.c.bf16 %v1487_v22, %v1486_v21  ;;  %v1470_v27 = vld [vmem:[#allocation2 + $0x60] sm:$0xff]  ;;  %v1471_v28 = vld [vmem:[#allocation2 + $0x68] sm:$0xff]  ;;  %v1484_v29 = vld [vmem:[#allocation2 + $0xd0] sm:$0xff]  ;;  %v1412_v33 = vshrl.u32 %v1411_v18, 7 }
 0x374   : > { %2163 = vmatprep.subr.bf16.mxu0 %v1505_v19  ;;  %2387 = vmatprep.subr.bf16.mxu1 %v1505_v19  ;;  %v1485_v30 = vld [vmem:[#allocation2 + $0xd8] sm:$0xff]  ;;  %v1496_v31 = vpack.c.bf16 %v1471_v28, %v1470_v27  ;;  %v1410_v32 = vunpack.c.0.s8 %v1409_v24  ;;  %v1468_v35 = vld [vmem:[#allocation2 + $0x50] sm:$0xff]  ;;  %v1482_v37 = vld [vmem:[#allocation2 + $0xc0] sm:$0xff] }
 0x375   : > { %2164 = vmatpush3.bf16.msra.mxu0 %v1497_v25  ;;  %2395 = vmatpush3.bf16.msra.mxu1 %v1497_v25  ;;  %v1503_v34 = vpack.c.bf16 %v1485_v30, %v1484_v29  ;;  %v1469_v36 = vld [vmem:[#allocation2 + $0x58] sm:$0xff]  ;;  %v1483_v38 = vld [vmem:[#allocation2 + $0xc8] sm:$0xff]  ;;  %v1466_v42 = vld [vmem:[#allocation2 + $0x40] sm:$0xff]  ;;  %v1427_v50 = vsub.s32 0, %v1412_v33 }
 0x376   : > { %2165 = vmatprep.subr.bf16.mxu0 %v1504_v26  ;;  %2388 = vmatprep.subr.bf16.mxu1 %v1504_v26  ;;  %v1495_v39 = vpack.c.bf16 %v1469_v36, %v1468_v35  ;;  %v1413_v40 = vsub.s32 %v1410_v32, %v1412_v33  ;;  %v1502_v41 = vpack.c.bf16 %v1483_v38, %v1482_v37  ;;  %v1467_v43 = vld [vmem:[#allocation2 + $0x48] sm:$0xff]  ;;  %v1480_v44 = vld [vmem:[#allocation2 + $0xb0] sm:$0xff]  ;;  %v1481_v45 = vld [vmem:[#allocation2 + $0xb8] sm:$0xff] }
 0x377   : > { %v2061_v46 = vld.sshfl [vmem:[#allocation3] sm:$0x11 pattern:$0x75316420]  ;;  %v1494_v47 = vpack.c.bf16 %v1467_v43, %v1466_v42  ;;  %v1501_v51 = vpack.c.bf16 %v1481_v45, %v1480_v44  ;;  %v1464_v52 = vld [vmem:[#allocation2 + $0x30] sm:$0xff]  ;;  %v1465_v53 = vld [vmem:[#allocation2 + $0x38] sm:$0xff] }
 0x378   : > { %v1407_v48 = vcombine.high %v2061_v46, %v2061_v46  ;;  %v1414_v49 = vrot.slane %v2061_v46, %v1413_v40  ;;  %v1478_v54 = vld [vmem:[#allocation2 + $0xa0] sm:$0xff]  ;;  %v1479_v55 = vld [vmem:[#allocation2 + $0xa8] sm:$0xff]  ;;  %v1493_v58 = vpack.c.bf16 %v1465_v53, %v1464_v52  ;;  %v1476_v1 = vld [vmem:[#allocation2 + $0x90] sm:$0xff] }
 0x379   : > { %2166 = vmatpush3.bf16.msra.mxu0 %v1496_v31  ;;  %2396 = vmatpush3.bf16.msra.mxu1 %v1496_v31  ;;  %v1500_v61 = vpack.c.bf16 %v1479_v55, %v1478_v54  ;;  %v1462_v62 = vld [vmem:[#allocation2 + $0x20] sm:$0xff]  ;;  %v1463_v63 = vld [vmem:[#allocation2 + $0x28] sm:$0xff]  ;;  %v1477_v3 = vld [vmem:[#allocation2 + $0x98] sm:$0xff] }
 0x37a   : > { %2167 = vmatprep.subr.bf16.mxu0 %v1503_v34  ;;  %2389 = vmatprep.subr.bf16.mxu1 %v1503_v34  ;;  %v1421_v56 = vrot.slane %v1407_v48, %v1413_v40  ;;  %v1423_v57 = vpack.i.b16 %v1414_v49, %v1414_v49  ;;  %v1382_v4 = vld [vmem:[%s2849_s23] sm:$0xff]  ;;  %v1383_v6 = vld [vmem:[%s2849_s23 + $0x8] sm:$0xff]  ;;  %v1492_v7 = vpack.c.bf16 %v1463_v63, %v1462_v62  ;;  %v1461_v11 = vld [vmem:[#allocation2 + $0x18] sm:$0xff] }
 0x37b   : > { %v1390_v0 = vld [vmem:[%s2849_s23 + $0x40] sm:$0xff]  ;;  %v1391_v2 = vld [vmem:[%s2849_s23 + $0x48] sm:$0xff]  ;;  %v1499_v9 = vpack.c.bf16 %v1477_v3, %v1476_v1  ;;  %v1384_v23 = vld [vmem:[%s2849_s23 + $0x10] sm:$0xff] }
 0x37c   : > { %v1428_v59 = vrot.slane %v1423_v57, %v1427_v50  ;;  %v1430_v60 = vpack.i.b16 %v1421_v56, %v1421_v56  ;;  %v1460_v10 = vld [vmem:[#allocation2 + $0x10] sm:$0xff]  ;;  %v1474_v12 = vld [vmem:[#allocation2 + $0x80] sm:$0xff]  ;;  %v1475_v13 = vld [vmem:[#allocation2 + $0x88] sm:$0xff] }
 0x37d   : > { %2168 = vmatpush3.bf16.msra.mxu0 %v1495_v39  ;;  %2397 = vmatpush3.bf16.msra.mxu1 %v1495_v39  ;;  %v1491_v18 = vpack.c.bf16 %v1461_v11, %v1460_v10  ;;  %v1458_v19 = vld [vmem:[#allocation2] sm:$0xff]  ;;  %v1459_v20 = vld [vmem:[#allocation2 + $0x8] sm:$0xff]  ;;  %v1498_v24 = vpack.c.bf16 %v1475_v13, %v1474_v12  ;;  %v1392_v26 = vld [vmem:[%s2849_s23 + $0x50] sm:$0xff] }
 0x37e   : > { %2169 = vmatprep.subr.bf16.mxu0 %v1502_v41  ;;  %2390 = vmatprep.subr.bf16.mxu1 %v1502_v41  ;;  %v1435_v5 = vrot.slane %v1430_v60, %v1427_v50  ;;  %v1385_v25 = vld [vmem:[%s2849_s23 + $0x18] sm:$0xff]  ;;  %v1490_v28 = vpack.c.bf16 %v1459_v20, %v1458_v19  ;;  %v1386_v37 = vld [vmem:[%s2849_s23 + $0x20] sm:$0xff]  ;;  %v1387_v38 = vld [vmem:[%s2849_s23 + $0x28] sm:$0xff] }
 0x37f   : > { %v1393_v27 = vld [vmem:[%s2849_s23 + $0x58] sm:$0xff]  ;;  %v1394_v39 = vld [vmem:[%s2849_s23 + $0x60] sm:$0xff]  ;;  %v1395_v40 = vld [vmem:[%s2849_s23 + $0x68] sm:$0xff] }
 0x380   : > { %v3143_v8 = vcombine.low %v1428_v59, %v1435_v5  ;;  %v1388_v49 = vld [vmem:[%s2849_s23 + $0x30] sm:$0xff]  ;;  %v1389_v50 = vld [vmem:[%s2849_s23 + $0x38] sm:$0xff] }
 0x381   : > { %2170 = vmatpush3.bf16.msra.mxu0 %v1494_v47  ;;  %2398 = vmatpush3.bf16.msra.mxu1 %v1494_v47  ;;  %v1397_v52 = vld [vmem:[%s2849_s23 + $0x78] sm:$0xff] }
 0x382   : > { %2171 = vmatprep.subr.bf16.mxu0 %v1501_v51  ;;  %2391 = vmatprep.subr.bf16.mxu1 %v1501_v51  ;;  %v1442_v14 = vmul.bf16 %v3143_v8, %v1382_v4  ;;  %v1443_v15 = vmul.bf16 %v3143_v8, %v1383_v6  ;;  %v1450_v16 = vmul.bf16 %v3143_v8, %v1390_v0  ;;  %v1396_v51 = vld [vmem:[%s2849_s23 + $0x70] sm:$0xff] }
 0x383   : > { %v1451_v17 = vmul.bf16 %v3143_v8, %v1391_v2  ;;  %v1444_v29 = vmul.bf16 %v3143_v8, %v1384_v23  ;;  %v1445_v30 = vmul.bf16 %v3143_v8, %v1385_v25  ;;  %v1452_v31 = vmul.bf16 %v3143_v8, %v1392_v26 }
 0x384   : > { %v2064_v21 = vcombine.high %v1442_v14, %v1443_v15  ;;  %v1453_v32 = vmul.bf16 %v3143_v8, %v1393_v27  ;;  %v2063_v33 = vcombine.low %v1442_v14, %v1443_v15  ;;  %v1446_v41 = vmul.bf16 %v3143_v8, %v1386_v37 }
 0x385   : > { %2172 = vmatpush3.bf16.msra.mxu0 %v1493_v58  ;;  %2399 = vmatpush3.bf16.msra.mxu1 %v1493_v58  ;;  %v2072_v22 = vcombine.high %v1450_v16, %v1451_v17  ;;  %v2071_v34 = vcombine.low %v1450_v16, %v1451_v17  ;;  %v2066_v35 = vcombine.high %v1444_v29, %v1445_v30 }
 0x386   : > { %2173 = vmatprep.subr.bf16.mxu0 %v1500_v61  ;;  %2392 = vmatprep.subr.bf16.mxu1 %v1500_v61  ;;  %v2074_v36 = vcombine.high %v1452_v31, %v1453_v32  ;;  %v1447_v42 = vmul.bf16 %v3143_v8, %v1387_v38  ;;  %v1454_v43 = vmul.bf16 %v3143_v8, %v1394_v39 }
 0x387   : > { %1618 = vmatprep.mubr.bf16.mxu0 %v2064_v21  ;;  %1650 = vmatprep.mubr.bf16.mxu1 %v2072_v22  ;;  %v1455_v44 = vmul.bf16 %v3143_v8, %v1395_v40  ;;  %v2065_v45 = vcombine.low %v1444_v29, %v1445_v30  ;;  %v2073_v46 = vcombine.low %v1452_v31, %v1453_v32 }
 0x388   : > { %v2068_v47 = vcombine.high %v1446_v41, %v1447_v42  ;;  %v1448_v53 = vmul.bf16 %v3143_v8, %v1388_v49  ;;  %v1449_v54 = vmul.bf16 %v3143_v8, %v1389_v50  ;;  %v1456_v55 = vmul.bf16 %v3143_v8, %v1396_v51 }
 0x389   : > { %2174 = vmatpush3.bf16.msra.mxu0 %v1492_v7  ;;  %2400 = vmatpush3.bf16.msra.mxu1 %v1492_v7  ;;  %v2076_v48 = vcombine.high %v1454_v43, %v1455_v44  ;;  %v1457_v56 = vmul.bf16 %v3143_v8, %v1397_v52  ;;  %v2067_v57 = vcombine.low %v1446_v41, %v1447_v42 }
 0x38a   : > { %2175 = vmatprep.subr.bf16.mxu0 %v1499_v9  ;;  %2393 = vmatprep.subr.bf16.mxu1 %v1499_v9  ;;  %v2075_v58 = vcombine.low %v1454_v43, %v1455_v44  ;;  %v2070_v59 = vcombine.high %v1448_v53, %v1449_v54  ;;  %v2069_v61 = vcombine.low %v1448_v53, %v1449_v54 }
 0x38b   : > { %v2078_v60 = vcombine.high %v1456_v55, %v1457_v56  ;;  %v2077_v62 = vcombine.low %v1456_v55, %v1457_v56 }
 0x38d   : > { %2176 = vmatpush3.bf16.msra.mxu0 %v1491_v18  ;;  %2401 = vmatpush3.bf16.msra.mxu1 %v1491_v18 }
 0x38e   : > { %2177 = vmatprep.subr.bf16.mxu0 %v1498_v24  ;;  %2394 = vmatprep.subr.bf16.mxu1 %v1498_v24 }
 0x391   : > { %2178 = vmatpush3.bf16.msra.mxu0 %v1490_v28  ;;  %2402 = vmatpush3.bf16.msra.mxu1 %v1490_v28 }
 0x394   : > { %1619 = vmatmul.mubr.bf16.vlgmr.msra.gmra.mxu0 %v2063_v33  ;;  %1651 = vmatmul.mubr.bf16.vlgmr.msra.gmra.mxu1 %v2071_v34 }
 0x395   : > { %1626 = vmatprep.mubr.bf16.mxu0 %v2066_v35  ;;  %1658 = vmatprep.mubr.bf16.mxu1 %v2074_v36 }
 0x39c   : > { %1627 = vmatmul.mubr.bf16.gmra.mxu0 %v2065_v45  ;;  %1659 = vmatmul.mubr.bf16.gmra.mxu1 %v2073_v46 }
 0x39d   : > { %1634 = vmatprep.mubr.bf16.mxu0 %v2068_v47  ;;  %1666 = vmatprep.mubr.bf16.mxu1 %v2076_v48 }
 0x3a4   : > { %1635 = vmatmul.mubr.bf16.gmra.mxu0 %v2067_v57  ;;  %1667 = vmatmul.mubr.bf16.gmra.mxu1 %v2075_v58 }
 0x3a5   : > { %1642 = vmatprep.mubr.bf16.mxu0 %v2070_v59  ;;  %1674 = vmatprep.mubr.bf16.mxu1 %v2078_v60 }
 0x3ac   : > { %1643 = vmatmul.mubr.bf16.gmra.mxu0 %v2069_v61  ;;  %1675 = vmatmul.mubr.bf16.gmra.mxu1 %v2077_v62 }
 0x454   : > { %v2179_v63 = vpop.f32.mrf.mxu0  ;;  %v2203_v1 = vpop.f32.mrf.mxu1 }
 0x456   : > { %v2180_v3 = vpop.f32.mrf.mxu0  ;;  %v2204_v4 = vpop.f32.mrf.mxu1 }
 0x457   : > { %v3173_v5 = vadd.f32 %v2180_v3, %v2179_v63  ;;  %v3175_v2 = vadd.f32 %v2204_v4, %v2203_v1 }
 0x458   : > { %v2182_v6 = vpop.f32.mrf.mxu0  ;;  %v2206_v0 = vpop.f32.mrf.mxu1 }
 0x459   : > { %v1684_v7 = vsel %vm1683_vm10, %v3173_v5, -inf  ;;  %v1708_v15 = vsel %vm1683_vm10, %v3175_v2, -inf }
 0x45a   : > { %v2183_v8 = vpop.f32.mrf.mxu0  ;;  %v2207_v9 = vpop.f32.mrf.mxu1  ;;  %1685 = vmax.xlane.f32.xlu0 %v1684_v7 }
 0x45b   : > { %v3179_v10 = vadd.f32 %v2207_v9, %v2206_v0  ;;  %v3181_v13 = vadd.f32 %v2183_v8, %v2182_v6 }
 0x45c   : > { %v2185_v11 = vpop.f32.mrf.mxu0  ;;  %v2209_v12 = vpop.f32.mrf.mxu1 }
 0x45d   : > { %v1711_v14 = vsel %vm1683_vm10, %v3179_v10, -inf  ;;  %v1687_v23 = vsel %vm1683_vm10, %v3181_v13, -inf }
 0x45e   : > { %1712 = vmax.xlane.f32.xlu1 %v1711_v14  ;;  %v2186_v16 = vpop.f32.mrf.mxu0  ;;  %1709 = vmax.xlane.f32.xlu0 %v1708_v15  ;;  %v2210_v17 = vpop.f32.mrf.mxu1 }
 0x45f   : > { %v3187_v18 = vadd.f32 %v2186_v16, %v2185_v11  ;;  %v3189_v19 = vadd.f32 %v2210_v17, %v2209_v12 }
 0x460   : > { %v2188_v20 = vpop.f32.mrf.mxu0  ;;  %v2212_v21 = vpop.f32.mrf.mxu1 }
 0x461   : > { %v1690_v22 = vsel %vm1683_vm10, %v3187_v18, -inf  ;;  %v1714_v27 = vsel %vm1683_vm10, %v3189_v19, -inf }
 0x462   : > { %v2189_v24 = vpop.f32.mrf.mxu0  ;;  %1691 = vmax.xlane.f32.xlu1 %v1690_v22  ;;  %1688 = vmax.xlane.f32.xlu0 %v1687_v23  ;;  %v2213_v25 = vpop.f32.mrf.mxu1 }
 0x463   : > { %v3195_v26 = vadd.f32 %v2189_v24, %v2188_v20  ;;  %v3199_v30 = vadd.f32 %v2213_v25, %v2212_v21 }
 0x464   : > { %v2191_v28 = vpop.f32.mrf.mxu0  ;;  %v2215_v29 = vpop.f32.mrf.mxu1 }
 0x465   : > { %v1693_v31 = vsel %vm1683_vm10, %v3195_v26, -inf  ;;  %v1717_v38 = vsel %vm1683_vm10, %v3199_v30, -inf }
 0x466   : > { %v2192_v32 = vpop.f32.mrf.mxu0  ;;  %1694 = vmax.xlane.f32.xlu1 %v1693_v31  ;;  %1715 = vmax.xlane.f32.xlu0 %v1714_v27  ;;  %v2216_v33 = vpop.f32.mrf.mxu1 }
 0x467   : > { %v3203_v34 = vadd.f32 %v2192_v32, %v2191_v28  ;;  %v3205_v35 = vadd.f32 %v2216_v33, %v2215_v29 }
 0x468   : > { %v2194_v36 = vpop.f32.mrf.mxu0  ;;  %v2218_v37 = vpop.f32.mrf.mxu1 }
 0x469   : > { %v1696_v39 = vsel %vm1683_vm10, %v3203_v34, -inf  ;;  %v1720_v43 = vsel %vm1683_vm10, %v3205_v35, -inf }
 0x46a   : > { %v2195_v40 = vpop.f32.mrf.mxu0  ;;  %1718 = vmax.xlane.f32.xlu1 %v1717_v38  ;;  %1697 = vmax.xlane.f32.xlu0 %v1696_v39  ;;  %v2219_v41 = vpop.f32.mrf.mxu1 }
 0x46b   : > { %v3211_v42 = vadd.f32 %v2195_v40, %v2194_v36  ;;  %v3215_v46 = vadd.f32 %v2219_v41, %v2218_v37 }
 0x46c   : > { %v2197_v44 = vpop.f32.mrf.mxu0  ;;  %v2221_v45 = vpop.f32.mrf.mxu1 }
 0x46d   : > { %v1699_v47 = vsel %vm1683_vm10, %v3211_v42, -inf  ;;  %v1723_v54 = vsel %vm1683_vm10, %v3215_v46, -inf }
 0x46e   : > { %v2198_v48 = vpop.f32.mrf.mxu0  ;;  %1700 = vmax.xlane.f32.xlu1 %v1699_v47  ;;  %1721 = vmax.xlane.f32.xlu0 %v1720_v43  ;;  %v2222_v49 = vpop.f32.mrf.mxu1 }
 0x46f   : > { %v3219_v50 = vadd.f32 %v2198_v48, %v2197_v44  ;;  %v3221_v51 = vadd.f32 %v2222_v49, %v2221_v45 }
 0x470   : > { %v2200_v52 = vpop.f32.mrf.mxu0  ;;  %v2224_v53 = vpop.f32.mrf.mxu1 }
 0x471   : > { %v1702_v55 = vsel %vm1683_vm10, %v3219_v50, -inf  ;;  %v1726_v59 = vsel %vm1683_vm10, %v3221_v51, -inf }
 0x472   : > { %v2201_v56 = vpop.f32.mrf.mxu0  ;;  %1724 = vmax.xlane.f32.xlu1 %v1723_v54  ;;  %1703 = vmax.xlane.f32.xlu0 %v1702_v55  ;;  %v2225_v57 = vpop.f32.mrf.mxu1 }
 0x473   : > { %v3227_v58 = vadd.f32 %v2201_v56, %v2200_v52  ;;  %v3231_v60 = vadd.f32 %v2225_v57, %v2224_v53 }
 0x475   : > { %v1705_v61 = vsel %vm1683_vm10, %v3227_v58, -inf  ;;  %v1729_v62 = vsel %vm1683_vm10, %v3231_v60, -inf }
 0x476   : > { %1706 = vmax.xlane.f32.xlu1 %v1705_v61  ;;  %1727 = vmax.xlane.f32.xlu0 %v1726_v59 }
 0x47a   : > { %1730 = vmax.xlane.f32.xlu1 %v1729_v62 }
 0x4e3   : > { %v1686_v63 = vpop.xlane.xlu0 %1685 }
 0x4e4   : > { %v3238_v1 = vsub.f32 %v3173_v5, %v1686_v63 }
 0x4e6   : > { %v1748_v3 = vmul.f32 1.442695, %v3238_v1 }
 0x4e7   : > { %v1713_v4 = vpop.xlane.xlu1 %1712  ;;  %v1710_v6 = vpop.xlane.xlu0 %1709 }
 0x4e8   : > { %2515 = vpow2.f32 %v1748_v3  ;;  %v3242_v0 = vsub.f32 %v3175_v2, %v1710_v6  ;;  %v3246_v8 = vsub.f32 %v3179_v10, %v1713_v4 }
 0x4ea   : > { %v1764_v7 = vmul.f32 1.442695, %v3242_v0  ;;  %v1766_v2 = vmul.f32 1.442695, %v3246_v8 }
 0x4eb   : > { %v1692_v9 = vpop.xlane.xlu1 %1691  ;;  %v1689_v11 = vpop.xlane.xlu0 %1688 }
 0x4ec   : > { %v3249_v12 = vsub.f32 %v3187_v18, %v1692_v9  ;;  %v3252_v5 = vsub.f32 %v3181_v13, %v1689_v11  ;;  %2517 = vpow2.f32 %v1764_v7 }
 0x4ee   : > { %v1752_v14 = vmul.f32 1.442695, %v3249_v12  ;;  %v1750_v15 = vmul.f32 1.442695, %v3252_v5 }
 0x4ef   : > { %v1695_v16 = vpop.xlane.xlu1 %1694  ;;  %v1716_v17 = vpop.xlane.xlu0 %1715 }
 0x4f0   : > { %2519 = vpow2.f32 %v1752_v14  ;;  %v3258_v10 = vsub.f32 %v3195_v26, %v1695_v16  ;;  %v3261_v20 = vsub.f32 %v3189_v19, %v1716_v17 }
 0x4f1   : > { %2521 = vpow2.f32 %v1750_v15 }
 0x4f2   : > { %v1768_v13 = vmul.f32 1.442695, %v3261_v20  ;;  %2523 = vpow2.f32 %v1766_v2  ;;  %v1754_v18 = vmul.f32 1.442695, %v3258_v10 }
 0x4f3   : > { %v1719_v21 = vpop.xlane.xlu1 %1718  ;;  %v1698_v22 = vpop.xlane.xlu0 %1697 }
 0x4f4   : > { %v3266_v23 = vsub.f32 %v3199_v30, %v1719_v21  ;;  %v3269_v24 = vsub.f32 %v3203_v34, %v1698_v22  ;;  %2525 = vpow2.f32 %v1768_v13 }
 0x4f5   : > { %v2516_v25 = vpop.eup %2515  ;;  %2527 = vpow2.f32 %v1754_v18 }
 0x4f6   : > { %v1756_v26 = vmul.f32 1.442695, %v3269_v24  ;;  %v1780_v19 = vsel %vm1683_vm10, %v2516_v25, 0.0  ;;  %v1770_v27 = vmul.f32 1.442695, %v3266_v23 }
 0x4f7   : > { %v1701_v28 = vpop.xlane.xlu1 %1700  ;;  %1781 = vadd.xlane.f32.xlu0 %v1780_v19  ;;  %v1722_v29 = vpop.xlane.xlu0 %1721 }
 0x4f8   : > { %v3275_v31 = vsub.f32 %v3211_v42, %v1701_v28  ;;  %v3278_v30 = vsub.f32 %v3205_v35, %v1722_v29  ;;  %2529 = vpow2.f32 %v1756_v26 }
 0x4f9   : > { %v2518_v32 = vpop.eup %2517  ;;  %2531 = vpow2.f32 %v1770_v27 }
 0x4fa   : > { %v1772_v33 = vmul.f32 1.442695, %v3278_v30  ;;  %v1758_v34 = vmul.f32 1.442695, %v3275_v31  ;;  %v1804_v37 = vsel %vm1683_vm10, %v2518_v32, 0.0 }
 0x4fb   : > { %v1725_v36 = vpop.xlane.xlu1 %1724  ;;  %v1704_v38 = vpop.xlane.xlu0 %1703  ;;  %1805 = vadd.xlane.f32.xlu0 %v1804_v37 }
 0x4fc   : > { %v3284_v39 = vsub.f32 %v3215_v46, %v1725_v36  ;;  %v3287_v40 = vsub.f32 %v3219_v50, %v1704_v38  ;;  %2533 = vpow2.f32 %v1772_v33 }
 0x4fd   : > { %v2520_v35 = vpop.eup %2519  ;;  %2535 = vpow2.f32 %v1758_v34 }
 0x4fe   : > { %v2522_v41 = vpop.eup %2521  ;;  %v1760_v42 = vmul.f32 1.442695, %v3287_v40  ;;  %v1786_v43 = vsel %vm1683_vm10, %v2520_v35, 0.0  ;;  %v1774_v44 = vmul.f32 1.442695, %v3284_v39 }
 0x4ff   : > { %v1707_v45 = vpop.xlane.xlu1 %1706  ;;  %v1783_v47 = vsel %vm1683_vm10, %v2522_v41, 0.0  ;;  %v1728_v48 = vpop.xlane.xlu0 %1727  ;;  %1787 = vadd.xlane.f32.xlu0 %v1786_v43 }
 0x500   : > { %v2524_v46 = vpop.eup %2523  ;;  %v3294_v49 = vsub.f32 %v3227_v58, %v1707_v45  ;;  %1784 = vadd.xlane.f32.xlu1 %v1783_v47  ;;  %v3297_v50 = vsub.f32 %v3221_v51, %v1728_v48  ;;  %2537 = vpow2.f32 %v1760_v42 }
 0x501   : > { %v2526_v52 = vpop.eup %2525  ;;  %2539 = vpow2.f32 %v1774_v44  ;;  %v1807_v56 = vsel %vm1683_vm10, %v2524_v46, 0.0 }
 0x502   : > { %v1776_v53 = vmul.f32 1.442695, %v3297_v50  ;;  %v1762_v54 = vmul.f32 1.442695, %v3294_v49  ;;  %v1810_v57 = vsel %vm1683_vm10, %v2526_v52, 0.0  ;;  %v2528_v59 = vpop.eup %2527 }
 0x503   : > { %v1731_v55 = vpop.xlane.xlu1 %1730  ;;  %1811 = vadd.xlane.f32.xlu0 %v1810_v57  ;;  %v1789_v62 = vsel %vm1683_vm10, %v2528_v59, 0.0 }
 0x504   : > { %v3304_v58 = vsub.f32 %v3231_v60, %v1731_v55  ;;  %1808 = vadd.xlane.f32.xlu1 %v1807_v56  ;;  %2541 = vpow2.f32 %v1776_v53 }
 0x505   : > { %v2530_v51 = vpop.eup %2529  ;;  %2543 = vpow2.f32 %v1762_v54 }
 0x506   : > { %v1778_v61 = vmul.f32 1.442695, %v3304_v58  ;;  %v1792_v63 = vsel %vm1683_vm10, %v2530_v51, 0.0  ;;  %v2532_v3 = vpop.eup %2531 }
 0x507   : > { %1793 = vadd.xlane.f32.xlu0 %v1792_v63  ;;  %v1813_v6 = vsel %vm1683_vm10, %v2532_v3, 0.0 }
 0x508   : > { %1790 = vadd.xlane.f32.xlu1 %v1789_v62  ;;  %2545 = vpow2.f32 %v1778_v61 }
 0x509   : > { %v2534_v4 = vpop.eup %2533 }
 0x50a   : > { %v1816_v60 = vsel %vm1683_vm10, %v2534_v4, 0.0  ;;  %v2536_v7 = vpop.eup %2535 }
 0x50b   : > { %1817 = vadd.xlane.f32.xlu0 %v1816_v60  ;;  %v1795_v11 = vsel %vm1683_vm10, %v2536_v7, 0.0 }
 0x50c   : > { %1814 = vadd.xlane.f32.xlu1 %v1813_v6 }
 0x50d   : > { %v2538_v9 = vpop.eup %2537 }
 0x50e   : > { %v1798_v14 = vsel %vm1683_vm10, %v2538_v9, 0.0  ;;  %v2540_v15 = vpop.eup %2539 }
 0x50f   : > { %1799 = vadd.xlane.f32.xlu0 %v1798_v14  ;;  %v1819_v16 = vsel %vm1683_vm10, %v2540_v15, 0.0 }
 0x510   : > { %1796 = vadd.xlane.f32.xlu1 %v1795_v11 }
 0x511   : > { %v2542_v2 = vpop.eup %2541 }
 0x512   : > { %v1822_v17 = vsel %vm1683_vm10, %v2542_v2, 0.0  ;;  %v2544_v13 = vpop.eup %2543 }
 0x513   : > { %1823 = vadd.xlane.f32.xlu0 %v1822_v17  ;;  %v1801_v18 = vsel %vm1683_vm10, %v2544_v13, 0.0 }
 0x514   : > { %1820 = vadd.xlane.f32.xlu1 %v1819_v16 }
 0x515   : > { %v2546_v21 = vpop.eup %2545 }
 0x516   : > { %v1825_v22 = vsel %vm1683_vm10, %v2546_v21, 0.0 }
 0x518   : > { %1802 = vadd.xlane.f32.xlu1 %v1801_v18 }
 0x51c   : > { %1826 = vadd.xlane.f32.xlu1 %v1825_v22 }
 0x580   : > { %v1782_v25 = vpop.xlane.xlu0 %1781 }
 0x581   : > { %2547 = vlog2.f32 %v1782_v25 }
 0x584   : > { %v1806_v26 = vpop.xlane.xlu0 %1805 }
 0x585   : > { %2549 = vlog2.f32 %v1806_v26 }
 0x588   : > { %v1788_v27 = vpop.xlane.xlu0 %1787 }
 0x589   : > { %v1785_v19 = vpop.xlane.xlu1 %1784 }
 0x58a   : > { %2551 = vlog2.f32 %v1785_v19 }
 0x58b   : > { %2553 = vlog2.f32 %v1788_v27 }
 0x58c   : > { %v1812_v29 = vpop.xlane.xlu0 %1811 }
 0x58d   : > { %v1809_v28 = vpop.xlane.xlu1 %1808 }
 0x58e   : > { %v2548_v32 = vpop.eup %2547  ;;  %2555 = vlog2.f32 %v1809_v28 }
 0x58f   : > { %v1829_v33 = vmul.f32 0.6931472, %v2548_v32  ;;  %2557 = vlog2.f32 %v1812_v29 }
 0x590   : > { %v1794_v37 = vpop.xlane.xlu0 %1793 }
 0x591   : > { %v1860_v34 = vsub.f32 %v3238_v1, %v1829_v33  ;;  %v1791_v36 = vpop.xlane.xlu1 %1790 }
 0x592   : > { %2559 = vlog2.f32 %v1791_v36  ;;  %v2550_v38 = vpop.eup %2549 }
 0x593   : > { %1876 = vst.msk [vmem:[%s2864_s18] sm:$0xff] %vm1683_vm10, %v1860_v34  ;;  %2561 = vlog2.f32 %v1794_v37  ;;  %v1845_v35 = vmul.f32 0.6931472, %v2550_v38 }
 0x594   : > { %v1818_v42 = vpop.xlane.xlu0 %1817 }
 0x595   : > { %v1815_v41 = vpop.xlane.xlu1 %1814  ;;  %v1868_v43 = vsub.f32 %v3242_v0, %v1845_v35 }
 0x596   : > { %2563 = vlog2.f32 %v1815_v41 }
 0x597   : > { %v2552_v44 = vpop.eup %2551  ;;  %2565 = vlog2.f32 %v1818_v42  ;;  %1884 = vst.msk [vmem:[%s2864_s18 + $0x40] sm:$0xff] %vm1683_vm10, %v1868_v43 }
 0x598   : > { %v2554_v45 = vpop.eup %2553  ;;  %v1831_v1 = vmul.f32 0.6931472, %v2552_v44  ;;  %v1800_v46 = vpop.xlane.xlu0 %1799 }
 0x599   : > { %v1833_v47 = vmul.f32 0.6931472, %v2554_v45  ;;  %v1797_v48 = vpop.xlane.xlu1 %1796 }
 0x59a   : > { %v1861_v52 = vsub.f32 %v3252_v5, %v1831_v1  ;;  %2567 = vlog2.f32 %v1797_v48 }
 0x59b   : > { %v2556_v53 = vpop.eup %2555  ;;  %v1862_v54 = vsub.f32 %v3249_v12, %v1833_v47  ;;  %2569 = vlog2.f32 %v1800_v46 }
 0x59c   : > { %v2558_v0 = vpop.eup %2557  ;;  %1877 = vst.msk [vmem:[%s2864_s18 + $0x8] sm:$0xff] %vm1683_vm10, %v1861_v52  ;;  %v1847_v55 = vmul.f32 0.6931472, %v2556_v53  ;;  %v1824_v59 = vpop.xlane.xlu0 %1823 }
 0x59d   : > { %1878 = vst.msk [vmem:[%s2864_s18 + $0x10] sm:$0xff] %vm1683_vm10, %v1862_v54  ;;  %v1849_v56 = vmul.f32 0.6931472, %v2558_v0  ;;  %v1821_v57 = vpop.xlane.xlu1 %1820 }
 0x59e   : > { %v1869_v51 = vsub.f32 %v3246_v8, %v1847_v55  ;;  %2571 = vlog2.f32 %v1821_v57 }
 0x59f   : > { %v2560_v5 = vpop.eup %2559  ;;  %v1870_v61 = vsub.f32 %v3261_v20, %v1849_v56  ;;  %2573 = vlog2.f32 %v1824_v59 }
 0x5a0   : > { %v2562_v12 = vpop.eup %2561  ;;  %1885 = vst.msk [vmem:[%s2864_s18 + $0x48] sm:$0xff] %vm1683_vm10, %v1869_v51  ;;  %v1835_v62 = vmul.f32 0.6931472, %v2560_v5 }
 0x5a1   : > { %1886 = vst.msk [vmem:[%s2864_s18 + $0x50] sm:$0xff] %vm1683_vm10, %v1870_v61  ;;  %v1837_v63 = vmul.f32 0.6931472, %v2562_v12  ;;  %v1803_v3 = vpop.xlane.xlu1 %1802 }
 0x5a2   : > { %v1863_v4 = vsub.f32 %v3258_v10, %v1835_v62  ;;  %2575 = vlog2.f32 %v1803_v3 }
 0x5a3   : > { %v2564_v8 = vpop.eup %2563  ;;  %v1864_v6 = vsub.f32 %v3269_v24, %v1837_v63 }
 0x5a4   : > { %v2566_v60 = vpop.eup %2565  ;;  %1879 = vst.msk [vmem:[%s2864_s18 + $0x18] sm:$0xff] %vm1683_vm10, %v1863_v4  ;;  %v1851_v20 = vmul.f32 0.6931472, %v2564_v8 }
 0x5a5   : > { %1880 = vst.msk [vmem:[%s2864_s18 + $0x20] sm:$0xff] %vm1683_vm10, %v1864_v6  ;;  %v1853_v7 = vmul.f32 0.6931472, %v2566_v60  ;;  %v1827_v9 = vpop.xlane.xlu1 %1826 }
 0x5a6   : > { %v1871_v11 = vsub.f32 %v3266_v23, %v1851_v20  ;;  %2577 = vlog2.f32 %v1827_v9 }
 0x5a7   : > { %v2568_v14 = vpop.eup %2567  ;;  %v1872_v10 = vsub.f32 %v3278_v30, %v1853_v7 }
 0x5a8   : > { %v2570_v15 = vpop.eup %2569  ;;  %1887 = vst.msk [vmem:[%s2864_s18 + $0x58] sm:$0xff] %vm1683_vm10, %v1871_v11  ;;  %v1839_v24 = vmul.f32 0.6931472, %v2568_v14 }
 0x5a9   : > { %1888 = vst.msk [vmem:[%s2864_s18 + $0x60] sm:$0xff] %vm1683_vm10, %v1872_v10  ;;  %v1841_v2 = vmul.f32 0.6931472, %v2570_v15 }
 0x5aa   : > { %v1865_v16 = vsub.f32 %v3275_v31, %v1839_v24 }
 0x5ab   : > { %v2572_v17 = vpop.eup %2571  ;;  %v1866_v13 = vsub.f32 %v3287_v40, %v1841_v2 }
 0x5ac   : > { %v2574_v23 = vpop.eup %2573  ;;  %1881 = vst.msk [vmem:[%s2864_s18 + $0x28] sm:$0xff] %vm1683_vm10, %v1865_v16  ;;  %v1855_v30 = vmul.f32 0.6931472, %v2572_v17 }
 0x5ad   : > { %1882 = vst.msk [vmem:[%s2864_s18 + $0x30] sm:$0xff] %vm1683_vm10, %v1866_v13  ;;  %v1857_v18 = vmul.f32 0.6931472, %v2574_v23 }
 0x5ae   : > { %v1873_v21 = vsub.f32 %v3284_v39, %v1855_v30 }
 0x5af   : > { %v2576_v22 = vpop.eup %2575  ;;  %v1874_v25 = vsub.f32 %v3297_v50, %v1857_v18 }
 0x5b0   : > { %1889 = vst.msk [vmem:[%s2864_s18 + $0x68] sm:$0xff] %vm1683_vm10, %v1873_v21  ;;  %v1843_v31 = vmul.f32 0.6931472, %v2576_v22 }
 0x5b1   : > { %1890 = vst.msk [vmem:[%s2864_s18 + $0x70] sm:$0xff] %vm1683_vm10, %v1874_v25 }
 0x5b2   : > { %v1867_v40 = vsub.f32 %v3294_v49, %v1843_v31 }
 0x5b3   : > { %v2578_v26 = vpop.eup %2577 }
 0x5b4   : > { %1883 = vst.msk [vmem:[%s2864_s18 + $0x38] sm:$0xff] %vm1683_vm10, %v1867_v40  ;;  %v1859_v19 = vmul.f32 0.6931472, %v2578_v26 }
 0x5b6   : > { %v1875_v27 = vsub.f32 %v3304_v58, %v1859_v19 }
 0x5b8   : > { %1891 = vst.msk [vmem:[%s2864_s18 + $0x78] sm:$0xff] %vm1683_vm10, %v1875_v27 }
 0x5b9 PF: > { %s3420_s9 = sld [smem:[#allocation11_spill]]  ;;  %s3422_s27 = smov %s2668_s28 }
 0x5ba   : > { %s3423_s28 = smov %s2672_s29  ;;  %s3424_s29 = smov %s2833_s19 }
 0x5bb   : > { %s3425_s30 = smov %s2684_s10  ;;  %s3426_s10 = smov %s3429_s24 }
 0x5bc   : > { %s3427_s11 = smov %s3433_s25 }
 0x5bf   : > { %s22_s12 = sadd.s32 1, %s3420_s9   ;;  %s3421_s9 = sld [smem:[#allocation10_spill]] }
 0x5c0   : > { %p19_p13 = scmp.ge.s32.totalorder %s22_s12, 6  }
 0x5c2   :  { %21 = sbr.rel (!%p19_p13) target bundleno = 12 (0xc), region = 112 }
 0x5c7   :  { %1917 = vsyncpa [#allocation5], 1 }
 0x5c8   :  { %1919 = vsyncpa [#allocation5 + $0x1], 1 }
 0x5c9   :  { %1920 = vsyncpa [#allocation6], 1 }
 0x5ca   :  { %1922 = vsyncpa [#allocation6 + $0x1], 1 }

</bundles_post_ra>
